<compile_context>
chip_gen: v5e
topology: v5e:2x2
jax: 0.10.0
libtpu: 0.0.40
codegen_flags: <defaults>
</compile_context>

<pallas_src>
import functools

import jax
import jax.numpy as jnp
import numpy as np
from jax.experimental import pallas as pl
from jax.experimental.pallas import tpu as pltpu

_LANE = 128
_SUBLANE = 8
_MAX_UNROLL = 32  # timesteps per grid chunk (fully unrolled inside the kernel); even


def _round_up(n, m):
    return ((n + m - 1) // m) * m


def _gru_kernel(*refs, T, Tt, Bp, Hp, num_chunks, ndir, n_x):
    """One time-chunk of the (merged fwd/bwd) GRU recurrence.

    refs layout (positional):
      x_refs[0:n_x]        : [Tt*Bp, D] bf16   time-major input chunk(s)
                             (n_x == 2 only when the two directions need
                              different chunks at the same grid step)
      wih_ref              : [D, ndir*3*Hp] bf16  packed input->hidden weights
      whh_ref              : [ndir*Hp, ndir*3*Hp] bf16  block-diag hidden->hidden
      bgi_ref              : [1, ndir*3*Hp] f32   b_ih (+ b_hh for r,z) pre-folded
      bhn_ref              : [1, ndir*Hp]   f32   b_hh of the n gate
      out_ref              : [Bp, ndir*Hp]  f32   hidden state carry (fwd | bwd)
      gi_refs[0:ndir]      : [Tt*Bp, 3*Hp]  f32   scratch for hoisted input proj
    """
    x_refs = refs[:n_x]
    wih_ref, whh_ref, bgi_ref, bhn_ref, out_ref = refs[n_x:n_x + 5]
    gi_refs = refs[n_x + 5:]

    c = pl.program_id(0)

    @pl.when(c == 0)
    def _init():
        out_ref[...] = jnp.zeros_like(out_ref)

    # Hoisted input projection (off the serial chain): one MXU GEMM per
    # direction covering every timestep of the chunk.
    wih = wih_ref[...]                               # [D, ndir*3*Hp] bf16
    bgi = bgi_ref[...]                               # [1, ndir*3*Hp] f32
    for d in range(ndir):
        xd = x_refs[d if n_x > 1 else 0][...]
        gi_refs[d][...] = (
            jnp.dot(xd, wih[:, d * 3 * Hp:(d + 1) * 3 * Hp],
                    preferred_element_type=jnp.float32)
            + bgi[:, d * 3 * Hp:(d + 1) * 3 * Hp])

    bhn = bhn_ref[...]                               # [1, ndir*Hp] f32
    h = out_ref[...]                                 # [Bp, ndir*Hp] f32 carry

    rem = T % Tt
    last = num_chunks - 1
    for u in range(Tt):                              # fully unrolled (static)
        # ONE block-diagonal matmul yields BOTH directions' hidden gates.
        gh = jnp.dot(h.astype(jnp.bfloat16), whh_ref[...],
                     preferred_element_type=jnp.float32)   # [Bp, ndir*3*Hp]
        parts = []
        for d in range(ndir):
            p = u if d == 0 else Tt - 1 - u          # stored in-chunk position
            gi = gi_refs[d][pl.ds(p * Bp, Bp), :]    # sublane-aligned static slice
            ghd = gh[:, d * 3 * Hp:(d + 1) * 3 * Hp]
            hd = h[:, d * Hp:(d + 1) * Hp]
            r = jax.nn.sigmoid(gi[:, 0:Hp] + ghd[:, 0:Hp])
            z = jax.nn.sigmoid(gi[:, Hp:2 * Hp] + ghd[:, Hp:2 * Hp])
            n = jnp.tanh(gi[:, 2 * Hp:3 * Hp]
                         + r * (ghd[:, 2 * Hp:3 * Hp]
                                + bhn[:, d * Hp:(d + 1) * Hp]))
            hd_new = (1.0 - z) * n + z * hd
            if rem and p >= rem:
                # This stored position is a pad timestep iff it lies in the
                # (padded) last chunk of the ORIGINAL sequence; fwd hits that
                # chunk at grid step `last`, bwd at grid step 0.
                seq_chunk = c if d == 0 else last - c
                hd_new = jnp.where(seq_chunk != last, hd_new, hd)
            parts.append(hd_new)
        h = parts[0] if ndir == 1 else jnp.concatenate(parts, axis=1)

    out_ref[...] = h


@functools.partial(jax.jit, static_argnames=("hidden_dim", "bidirectional"))
def question_encoder_forward(x, packed, hidden_dim, bidirectional=False):
    """x: [B, T, in_dim] batch-first (PyTorch). Returns [B, H] or [B, 2H]."""
    B, T, D = x.shape
    H = hidden_dim
    Hp = _round_up(H, _LANE)
    ndir = 2 if bidirectional else 1

    Bp = _round_up(max(B, _SUBLANE), _SUBLANE)
    Tt = min(_round_up(T, 2), _MAX_UNROLL)     # even -> Tt*Bp is bf16-tile aligned
    num_chunks = -(-T // Tt)
    T_pad = num_chunks * Tt

    # Time-major, batch/time padded, flattened so each timestep is a
    # sublane-aligned row group: row t*Bp + b holds x[b, t, :].  bf16 halves
    # the HBM->VMEM traffic feeding the hoisted input GEMM.
    # (For large B*T this reshape should move to data-prep time.)
    x_tbd = jnp.transpose(x, (1, 0, 2)).astype(jnp.bfloat16)   # [T, B, D]
    x_tbd = jnp.pad(x_tbd, ((0, T_pad - T), (0, Bp - B), (0, 0)))
    x2d = x_tbd.reshape(T_pad * Bp, D)

    # x is DMA'd once per chunk when both directions read the same chunk
    # (single-chunk sequences or unidirectional); otherwise each direction
    # streams its own (time-reversed) chunk sequence.
    n_x = 1 if (ndir == 1 or num_chunks == 1) else 2
    if n_x == 1:
        x_specs = [pl.BlockSpec((Tt * Bp, D), lambda c: (c, 0))]
        x_args = [x2d]
    else:
        x_specs = [pl.BlockSpec((Tt * Bp, D), lambda c: (c, 0)),
                   pl.BlockSpec((Tt * Bp, D), lambda c: (num_chunks - 1 - c, 0))]
        x_args = [x2d, x2d]
    fixed = lambda c: (0, 0)

    kernel = functools.partial(
        _gru_kernel, T=T, Tt=Tt, Bp=Bp, Hp=Hp,
        num_chunks=num_chunks, ndir=ndir, n_x=n_x)

    # Honest VMEM budget: double-buffered x chunks + weights, single-buffered
    # gi scratch, f32 carry; 2x headroom, floor at 4 MiB.
    est = (n_x * 2 * Tt * Bp * D * 2                       # x chunks (bf16)
           + 2 * D * ndir * 3 * Hp * 2                     # wih (bf16)
           + 2 * ndir * Hp * ndir * 3 * Hp * 2             # whh (bf16)
           + 2 * ndir * 4 * Hp * 4                         # biases
           + ndir * Tt * Bp * 3 * Hp * 4                   # gi scratch
           + 2 * Bp * ndir * Hp * 4)                       # h carry / out
    vmem_limit = int(min(32 * 2**20, max(4 * 2**20, 2 * est)))

    out = pl.pallas_call(
        kernel,
        out_shape=jax.ShapeDtypeStruct((Bp, ndir * Hp), jnp.float32),
        grid=(num_chunks,),
        in_specs=x_specs + [
            pl.BlockSpec((D, ndir * 3 * Hp), fixed),
            pl.BlockSpec((ndir * Hp, ndir * 3 * Hp), fixed),
            pl.BlockSpec((1, ndir * 3 * Hp), fixed),
            pl.BlockSpec((1, ndir * Hp), fixed),
        ],
        out_specs=pl.BlockSpec((Bp, ndir * Hp), fixed),
        scratch_shapes=[pltpu.VMEM((Tt * Bp, 3 * Hp), jnp.float32)] * ndir,
        compiler_params=pltpu.CompilerParams(
            dimension_semantics=("arbitrary",),
            vmem_limit_bytes=vmem_limit),
    )(*x_args, packed["wih"], packed["whh"], packed["bgi"], packed["bhn"])

    fwd = out[:B, :H]
    if not bidirectional:
        return fwd
    bwd = out[:B, Hp:Hp + H]
    return jnp.concatenate([fwd, bwd], axis=1)


# ----------------------------- parameter handling -----------------------------

def init_params(key, in_dim, hidden_dim, bidirectional=False):
    """Deterministic init matching PyTorch GRU parameter shapes (gate order r,z,n)."""
    k = 1.0 / np.sqrt(hidden_dim)
    names = ["w_ih", "w_hh", "b_ih", "b_hh"]
    shapes = [(3 * hidden_dim, in_dim), (3 * hidden_dim, hidden_dim),
              (3 * hidden_dim,), (3 * hidden_dim,)]
    if bidirectional:
        names += [n + "_rev" for n in names]
        shapes += shapes[:4]
    keys = jax.random.split(key, len(names))
    return {
        n: jax.random.uniform(kk, s, jnp.float32, minval=-k, maxval=k)
        for n, s, kk in zip(names, shapes, keys)
    }


def prepare_params(params, hidden_dim, bidirectional=False):
    """One-time repack of PyTorch GRU weights into fused lane-padded slabs.

    wih : [D, ndir*3*Hp]  bf16  (gate order r,z,n; fwd slabs then bwd slabs)
    whh : [ndir*Hp, ndir*3*Hp] bf16 block-diagonal (one matmul -> both dirs)
    bgi : [1, ndir*3*Hp]  f32   b_ih (+ b_hh for r,z) pre-folded
    bhn : [1, ndir*Hp]    f32   b_hh of the n gate (multiplied by r in-kernel)
    """
    H = hidden_dim
    Hp = _round_up(H, _LANE)
    ndir = 2 if bidirectional else 1
    suffixes = [""] + (["_rev"] if bidirectional else [])
    D = np.asarray(params["w_ih"]).shape[1]

    wih_p = np.zeros((D, ndir * 3 * Hp), np.float32)
    whh_p = np.zeros((ndir * Hp, ndir * 3 * Hp), np.float32)
    bgi_p = np.zeros((1, ndir * 3 * Hp), np.float32)
    bhn_p = np.zeros((1, ndir * Hp), np.float32)
    for d, sfx in enumerate(suffixes):
        w_ih = np.asarray(params["w_ih" + sfx], np.float32).reshape(3, H, D)
        w_hh = np.asarray(params["w_hh" + sfx], np.float32).reshape(3, H, H)
        b_ih = np.asarray(params["b_ih" + sfx], np.float32).reshape(3, H)
        b_hh = np.asarray(params["b_hh" + sfx], np.float32).reshape(3, H)
        for g in range(3):
            cg = d * 3 * Hp + g * Hp
            wih_p[:, cg:cg + H] = w_ih[g].T
            whh_p[d * Hp:d * Hp + H, cg:cg + H] = w_hh[g].T
            bgi_p[0, cg:cg + H] = b_ih[g] + (b_hh[g] if g < 2 else 0.0)
        bhn_p[0, d * Hp:d * Hp + H] = b_hh[2]
    # Pad rows/cols stay exactly zero (also exact in bf16) so pad lanes of the
    # carried hidden state remain exactly zero -- keep this invariant.
    return {"wih": jnp.asarray(wih_p, jnp.bfloat16),
            "whh": jnp.asarray(whh_p, jnp.bfloat16),
            "bgi": jnp.asarray(bgi_p),
            "bhn": jnp.asarray(bhn_p)}


# --------------------------------- reference ----------------------------------

def _gru_reference_dir(x, w_ih, w_hh, b_ih, b_hh, reverse=False):
    B, T, D = x.shape
    H = w_hh.shape[1]
    w_ih = w_ih.reshape(3, H, D)
    w_hh = w_hh.reshape(3, H, H)
    b_ih = b_ih.reshape(3, H)
    b_hh = b_hh.reshape(3, H)
    h = jnp.zeros((B, H), jnp.float32)
    order = range(T - 1, -1, -1) if reverse else range(T)
    for t in order:
        x_t = x[:, t, :]
        r = jax.nn.sigmoid(x_t @ w_ih[0].T + b_ih[0] + h @ w_hh[0].T + b_hh[0])
        z = jax.nn.sigmoid(x_t @ w_ih[1].T + b_ih[1] + h @ w_hh[1].T + b_hh[1])
        n = jnp.tanh(x_t @ w_ih[2].T + b_ih[2] + r * (h @ w_hh[2].T + b_hh[2]))
        h = (1.0 - z) * n + z * h
    return h


def _encoder_reference(x, params, bidirectional=False):
    fwd = _gru_reference_dir(x, params["w_ih"], params["w_hh"],
                             params["b_ih"], params["b_hh"], reverse=False)
    if not bidirectional:
        return fwd
    bwd = _gru_reference_dir(x, params["w_ih_rev"], params["w_hh_rev"],
                             params["b_ih_rev"], params["b_hh_rev"], reverse=True)
    return jnp.concatenate([fwd, bwd], axis=1)


# ------------------------------------ main -------------------------------------

if __name__ == "__main__":
    IN_DIM, HIDDEN = 32, 32
    key = jax.random.PRNGKey(0)
    k1, k2, k3, k4, k5 = jax.random.split(key, 5)

    # --- unidirectional: B=2, T=8 (single chunk) ---
    x1 = jax.random.normal(k1, (2, 8, IN_DIM), dtype=jnp.float32)
    p1 = init_params(k2, IN_DIM, HIDDEN, bidirectional=False)
    pk1 = prepare_params(p1, HIDDEN, bidirectional=False)
    out1 = jax.block_until_ready(
        question_encoder_forward(x1, pk1, HIDDEN, bidirectional=False))
    ref1 = _encoder_reference(x1, p1, bidirectional=False)
    np.testing.assert_allclose(np.asarray(out1), np.asarray(ref1),
                               rtol=5e-2, atol=5e-2)
    assert out1.shape == (2, HIDDEN)

    # --- bidirectional: B=2, T=19 (odd length, single padded chunk, merged dirs) ---
    x2 = jax.random.normal(k3, (2, 19, IN_DIM), dtype=jnp.float32)
    p2 = init_params(k4, IN_DIM, HIDDEN, bidirectional=True)
    pk2 = prepare_params(p2, HIDDEN, bidirectional=True)
    out2 = jax.block_until_ready(
        question_encoder_forward(x2, pk2, HIDDEN, bidirectional=True))
    ref2 = _encoder_reference(x2, p2, bidirectional=True)
    np.testing.assert_allclose(np.asarray(out2), np.asarray(ref2),
                               rtol=5e-2, atol=5e-2)
    assert out2.shape == (2, 2 * HIDDEN)

    # --- bidirectional: B=2, T=40 (two chunks: remainder mask + reversed chunk reads) ---
    x3 = jax.random.normal(k5, (2, 40, IN_DIM), dtype=jnp.float32)
    out3 = jax.block_until_ready(
        question_encoder_forward(x3, pk2, HIDDEN, bidirectional=True))
    ref3 = _encoder_reference(x3, p2, bidirectional=True)
    np.testing.assert_allclose(np.asarray(out3), np.asarray(ref3),
                               rtol=5e-2, atol=5e-2)
    assert out3.shape == (2, 2 * HIDDEN)

    print("KERNEL_OK")
</pallas_src>

<mosaic_0001>
module attributes {stable_mosaic.version = 11 : i64} {
  func.func @_gru_kernel(%arg0: i32, %arg1: memref<64x32xbf16, #tpu.memory_space<vmem>>, %arg2: memref<32x384xbf16, #tpu.memory_space<vmem>>, %arg3: memref<128x384xbf16, #tpu.memory_space<vmem>>, %arg4: memref<1x384xf32, #tpu.memory_space<vmem>>, %arg5: memref<1x128xf32, #tpu.memory_space<vmem>>, %arg6: memref<8x128xf32, #tpu.memory_space<vmem>>, %arg7: memref<64x384xf32, #tpu.memory_space<vmem>>) attributes {dimension_semantics = [#tpu.dimension_semantics<arbitrary>], iteration_bounds = array<i64: 1>, scalar_prefetch = 0 : i64, scratch_operands = 1 : i64, tpu.core_type = #tpu.core_type<tc>, window_params = [{transform_indices = @transform_0, window_bounds = array<i64: 64, 32>}, {pipeline_mode = #tpu.pipeline_mode<synchronous>, transform_indices = @transform_1, window_bounds = array<i64: 32, 384>}, {pipeline_mode = #tpu.pipeline_mode<synchronous>, transform_indices = @transform_2, window_bounds = array<i64: 128, 384>}, {pipeline_mode = #tpu.pipeline_mode<synchronous>, transform_indices = @transform_3, window_bounds = array<i64: 1, 384>}, {pipeline_mode = #tpu.pipeline_mode<synchronous>, transform_indices = @transform_4, window_bounds = array<i64: 1, 128>}, {pipeline_mode = #tpu.pipeline_mode<synchronous>, transform_indices = @transform_5, window_bounds = array<i64: 8, 128>}]} {
    %c0_i32 = arith.constant 0 : i32
    %0 = arith.cmpi eq, %arg0, %c0_i32 : i32
    %1 = arith.extui %0 : i1 to i32
    %c0_i32_0 = arith.constant 0 : i32
    %2 = arith.cmpi ne, %1, %c0_i32_0 : i32
    scf.if %2 {
      %cst_71 = arith.constant 0.000000e+00 : f32
      %269 = vector.broadcast %cst_71 : f32 to vector<8x128xf32>
      %c0_72 = arith.constant 0 : index
      %c0_73 = arith.constant 0 : index
      %270 = vector.load %arg6[%c0_72, %c0_73] : memref<8x128xf32, #tpu.memory_space<vmem>>, vector<8x128xf32>
      tpu.vector_store %arg6[%c0_72, %c0_73], %269 {strides = array<i32>} : memref<8x128xf32, #tpu.memory_space<vmem>>, vector<8x128xf32>,
    } else {
    }
    %c0 = arith.constant 0 : index
    %c0_1 = arith.constant 0 : index
    %3 = vector.load %arg2[%c0, %c0_1] : memref<32x384xbf16, #tpu.memory_space<vmem>>, vector<32x384xbf16>
    %c0_2 = arith.constant 0 : index
    %c0_3 = arith.constant 0 : index
    %4 = vector.load %arg4[%c0_2, %c0_3] : memref<1x384xf32, #tpu.memory_space<vmem>>, vector<1x384xf32>
    %c0_4 = arith.constant 0 : index
    %c0_5 = arith.constant 0 : index
    %5 = vector.load %arg1[%c0_4, %c0_5] : memref<64x32xbf16, #tpu.memory_space<vmem>>, vector<64x32xbf16>
    %cst = arith.constant dense<0.000000e+00> : vector<64x384xf32>
    %6 = tpu.matmul %5, %3, %cst {dimension_numbers = #tpu.dot_dimension_numbers<[1], [0], [0], [1], [0, 0, 1, 1], [], []>} : vector<64x32xbf16>, vector<32x384xbf16>, vector<64x384xf32> -> vector<64x384xf32>
    %7 = vector.broadcast %4 : vector<1x384xf32> to vector<64x384xf32>
    %8 = arith.addf %6, %7 : vector<64x384xf32>
    %c0_6 = arith.constant 0 : index
    %c0_7 = arith.constant 0 : index
    %9 = vector.load %arg7[%c0_6, %c0_7] : memref<64x384xf32, #tpu.memory_space<vmem>>, vector<64x384xf32>
    tpu.vector_store %arg7[%c0_6, %c0_7], %8 {strides = array<i32>} : memref<64x384xf32, #tpu.memory_space<vmem>>, vector<64x384xf32>,
    %c0_8 = arith.constant 0 : index
    %c0_9 = arith.constant 0 : index
    %10 = vector.load %arg5[%c0_8, %c0_9] : memref<1x128xf32, #tpu.memory_space<vmem>>, vector<1x128xf32>
    %c0_10 = arith.constant 0 : index
    %c0_11 = arith.constant 0 : index
    %11 = vector.load %arg6[%c0_10, %c0_11] : memref<8x128xf32, #tpu.memory_space<vmem>>, vector<8x128xf32>
    %12 = arith.truncf %11 : vector<8x128xf32> to vector<8x128xbf16>
    %c0_12 = arith.constant 0 : index
    %c0_13 = arith.constant 0 : index
    %13 = vector.load %arg3[%c0_12, %c0_13] : memref<128x384xbf16, #tpu.memory_space<vmem>>, vector<128x384xbf16>
    %cst_14 = arith.constant dense<0.000000e+00> : vector<8x384xf32>
    %14 = tpu.matmul %12, %13, %cst_14 {dimension_numbers = #tpu.dot_dimension_numbers<[1], [0], [0], [1], [0, 0, 1, 1], [], []>} : vector<8x128xbf16>, vector<128x384xbf16>, vector<8x384xf32> -> vector<8x384xf32>
    %c0_15 = arith.constant 0 : index
    %c0_16 = arith.constant 0 : index
    %15 = vector.load %arg7[%c0_15, %c0_16] : memref<64x384xf32, #tpu.memory_space<vmem>>, vector<8x384xf32>
    %16 = vector.extract_strided_slice %15 {offsets = [0, 0], sizes = [8, 128], strides = [1, 1]} : vector<8x384xf32> to vector<8x128xf32>
    %17 = vector.extract_strided_slice %14 {offsets = [0, 0], sizes = [8, 128], strides = [1, 1]} : vector<8x384xf32> to vector<8x128xf32>
    %18 = arith.addf %16, %17 : vector<8x128xf32>
    %19 = arith.negf %18 : vector<8x128xf32>
    %20 = math.exp %19 : vector<8x128xf32>
    %cst_17 = arith.constant 1.000000e+00 : f32
    %21 = vector.broadcast %cst_17 : f32 to vector<8x128xf32>
    %22 = arith.addf %21, %20 : vector<8x128xf32>
    %23 = arith.divf %21, %22 : vector<8x128xf32>
    %24 = vector.extract_strided_slice %15 {offsets = [0, 128], sizes = [8, 128], strides = [1, 1]} : vector<8x384xf32> to vector<8x128xf32>
    %25 = vector.extract_strided_slice %14 {offsets = [0, 128], sizes = [8, 128], strides = [1, 1]} : vector<8x384xf32> to vector<8x128xf32>
    %26 = arith.addf %24, %25 : vector<8x128xf32>
    %27 = arith.negf %26 : vector<8x128xf32>
    %28 = math.exp %27 : vector<8x128xf32>
    %cst_18 = arith.constant 1.000000e+00 : f32
    %29 = vector.broadcast %cst_18 : f32 to vector<8x128xf32>
    %30 = arith.addf %29, %28 : vector<8x128xf32>
    %31 = arith.divf %29, %30 : vector<8x128xf32>
    %32 = vector.extract_strided_slice %15 {offsets = [0, 256], sizes = [8, 128], strides = [1, 1]} : vector<8x384xf32> to vector<8x128xf32>
    %33 = vector.extract_strided_slice %14 {offsets = [0, 256], sizes = [8, 128], strides = [1, 1]} : vector<8x384xf32> to vector<8x128xf32>
    %34 = vector.broadcast %10 : vector<1x128xf32> to vector<8x128xf32>
    %35 = arith.addf %33, %34 : vector<8x128xf32>
    %36 = arith.mulf %23, %35 : vector<8x128xf32>
    %37 = arith.addf %32, %36 : vector<8x128xf32>
    %38 = math.tanh %37 : vector<8x128xf32>
    %cst_19 = arith.constant 1.000000e+00 : f32
    %39 = vector.broadcast %cst_19 : f32 to vector<8x128xf32>
    %40 = arith.subf %39, %31 : vector<8x128xf32>
    %41 = arith.mulf %40, %38 : vector<8x128xf32>
    %42 = arith.mulf %31, %11 : vector<8x128xf32>
    %43 = arith.addf %41, %42 : vector<8x128xf32>
    %44 = arith.truncf %43 : vector<8x128xf32> to vector<8x128xbf16>
    %c0_20 = arith.constant 0 : index
    %c0_21 = arith.constant 0 : index
    %45 = vector.load %arg3[%c0_20, %c0_21] : memref<128x384xbf16, #tpu.memory_space<vmem>>, vector<128x384xbf16>
    %cst_22 = arith.constant dense<0.000000e+00> : vector<8x384xf32>
    %46 = tpu.matmul %44, %45, %cst_22 {dimension_numbers = #tpu.dot_dimension_numbers<[1], [0], [0], [1], [0, 0, 1, 1], [], []>} : vector<8x128xbf16>, vector<128x384xbf16>, vector<8x384xf32> -> vector<8x384xf32>
    %c8 = arith.constant 8 : index
    %c0_23 = arith.constant 0 : index
    %47 = vector.load %arg7[%c8, %c0_23] : memref<64x384xf32, #tpu.memory_space<vmem>>, vector<8x384xf32>
    %48 = vector.extract_strided_slice %47 {offsets = [0, 0], sizes = [8, 128], strides = [1, 1]} : vector<8x384xf32> to vector<8x128xf32>
    %49 = vector.extract_strided_slice %46 {offsets = [0, 0], sizes = [8, 128], strides = [1, 1]} : vector<8x384xf32> to vector<8x128xf32>
    %50 = arith.addf %48, %49 : vector<8x128xf32>
    %51 = arith.negf %50 : vector<8x128xf32>
    %52 = math.exp %51 : vector<8x128xf32>
    %cst_24 = arith.constant 1.000000e+00 : f32
    %53 = vector.broadcast %cst_24 : f32 to vector<8x128xf32>
    %54 = arith.addf %53, %52 : vector<8x128xf32>
    %55 = arith.divf %53, %54 : vector<8x128xf32>
    %56 = vector.extract_strided_slice %47 {offsets = [0, 128], sizes = [8, 128], strides = [1, 1]} : vector<8x384xf32> to vector<8x128xf32>
    %57 = vector.extract_strided_slice %46 {offsets = [0, 128], sizes = [8, 128], strides = [1, 1]} : vector<8x384xf32> to vector<8x128xf32>
    %58 = arith.addf %56, %57 : vector<8x128xf32>
    %59 = arith.negf %58 : vector<8x128xf32>
    %60 = math.exp %59 : vector<8x128xf32>
    %cst_25 = arith.constant 1.000000e+00 : f32
    %61 = vector.broadcast %cst_25 : f32 to vector<8x128xf32>
    %62 = arith.addf %61, %60 : vector<8x128xf32>
    %63 = arith.divf %61, %62 : vector<8x128xf32>
    %64 = vector.extract_strided_slice %47 {offsets = [0, 256], sizes = [8, 128], strides = [1, 1]} : vector<8x384xf32> to vector<8x128xf32>
    %65 = vector.extract_strided_slice %46 {offsets = [0, 256], sizes = [8, 128], strides = [1, 1]} : vector<8x384xf32> to vector<8x128xf32>
    %66 = vector.broadcast %10 : vector<1x128xf32> to vector<8x128xf32>
    %67 = arith.addf %65, %66 : vector<8x128xf32>
    %68 = arith.mulf %55, %67 : vector<8x128xf32>
    %69 = arith.addf %64, %68 : vector<8x128xf32>
    %70 = math.tanh %69 : vector<8x128xf32>
    %cst_26 = arith.constant 1.000000e+00 : f32
    %71 = vector.broadcast %cst_26 : f32 to vector<8x128xf32>
    %72 = arith.subf %71, %63 : vector<8x128xf32>
    %73 = arith.mulf %72, %70 : vector<8x128xf32>
    %74 = arith.mulf %63, %43 : vector<8x128xf32>
    %75 = arith.addf %73, %74 : vector<8x128xf32>
    %76 = arith.truncf %75 : vector<8x128xf32> to vector<8x128xbf16>
    %c0_27 = arith.constant 0 : index
    %c0_28 = arith.constant 0 : index
    %77 = vector.load %arg3[%c0_27, %c0_28] : memref<128x384xbf16, #tpu.memory_space<vmem>>, vector<128x384xbf16>
    %cst_29 = arith.constant dense<0.000000e+00> : vector<8x384xf32>
    %78 = tpu.matmul %76, %77, %cst_29 {dimension_numbers = #tpu.dot_dimension_numbers<[1], [0], [0], [1], [0, 0, 1, 1], [], []>} : vector<8x128xbf16>, vector<128x384xbf16>, vector<8x384xf32> -> vector<8x384xf32>
    %c16 = arith.constant 16 : index
    %c0_30 = arith.constant 0 : index
    %79 = vector.load %arg7[%c16, %c0_30] : memref<64x384xf32, #tpu.memory_space<vmem>>, vector<8x384xf32>
    %80 = vector.extract_strided_slice %79 {offsets = [0, 0], sizes = [8, 128], strides = [1, 1]} : vector<8x384xf32> to vector<8x128xf32>
    %81 = vector.extract_strided_slice %78 {offsets = [0, 0], sizes = [8, 128], strides = [1, 1]} : vector<8x384xf32> to vector<8x128xf32>
    %82 = arith.addf %80, %81 : vector<8x128xf32>
    %83 = arith.negf %82 : vector<8x128xf32>
    %84 = math.exp %83 : vector<8x128xf32>
    %cst_31 = arith.constant 1.000000e+00 : f32
    %85 = vector.broadcast %cst_31 : f32 to vector<8x128xf32>
    %86 = arith.addf %85, %84 : vector<8x128xf32>
    %87 = arith.divf %85, %86 : vector<8x128xf32>
    %88 = vector.extract_strided_slice %79 {offsets = [0, 128], sizes = [8, 128], strides = [1, 1]} : vector<8x384xf32> to vector<8x128xf32>
    %89 = vector.extract_strided_slice %78 {offsets = [0, 128], sizes = [8, 128], strides = [1, 1]} : vector<8x384xf32> to vector<8x128xf32>
    %90 = arith.addf %88, %89 : vector<8x128xf32>
    %91 = arith.negf %90 : vector<8x128xf32>
    %92 = math.exp %91 : vector<8x128xf32>
    %cst_32 = arith.constant 1.000000e+00 : f32
    %93 = vector.broadcast %cst_32 : f32 to vector<8x128xf32>
    %94 = arith.addf %93, %92 : vector<8x128xf32>
    %95 = arith.divf %93, %94 : vector<8x128xf32>
    %96 = vector.extract_strided_slice %79 {offsets = [0, 256], sizes = [8, 128], strides = [1, 1]} : vector<8x384xf32> to vector<8x128xf32>
    %97 = vector.extract_strided_slice %78 {offsets = [0, 256], sizes = [8, 128], strides = [1, 1]} : vector<8x384xf32> to vector<8x128xf32>
    %98 = vector.broadcast %10 : vector<1x128xf32> to vector<8x128xf32>
    %99 = arith.addf %97, %98 : vector<8x128xf32>
    %100 = arith.mulf %87, %99 : vector<8x128xf32>
    %101 = arith.addf %96, %100 : vector<8x128xf32>
    %102 = math.tanh %101 : vector<8x128xf32>
    %cst_33 = arith.constant 1.000000e+00 : f32
    %103 = vector.broadcast %cst_33 : f32 to vector<8x128xf32>
    %104 = arith.subf %103, %95 : vector<8x128xf32>
    %105 = arith.mulf %104, %102 : vector<8x128xf32>
    %106 = arith.mulf %95, %75 : vector<8x128xf32>
    %107 = arith.addf %105, %106 : vector<8x128xf32>
    %108 = arith.truncf %107 : vector<8x128xf32> to vector<8x128xbf16>
    %c0_34 = arith.constant 0 : index
    %c0_35 = arith.constant 0 : index
    %109 = vector.load %arg3[%c0_34, %c0_35] : memref<128x384xbf16, #tpu.memory_space<vmem>>, vector<128x384xbf16>
    %cst_36 = arith.constant dense<0.000000e+00> : vector<8x384xf32>
    %110 = tpu.matmul %108, %109, %cst_36 {dimension_numbers = #tpu.dot_dimension_numbers<[1], [0], [0], [1], [0, 0, 1, 1], [], []>} : vector<8x128xbf16>, vector<128x384xbf16>, vector<8x384xf32> -> vector<8x384xf32>
    %c24 = arith.constant 24 : index
    %c0_37 = arith.constant 0 : index
    %111 = vector.load %arg7[%c24, %c0_37] : memref<64x384xf32, #tpu.memory_space<vmem>>, vector<8x384xf32>
    %112 = vector.extract_strided_slice %111 {offsets = [0, 0], sizes = [8, 128], strides = [1, 1]} : vector<8x384xf32> to vector<8x128xf32>
    %113 = vector.extract_strided_slice %110 {offsets = [0, 0], sizes = [8, 128], strides = [1, 1]} : vector<8x384xf32> to vector<8x128xf32>
    %114 = arith.addf %112, %113 : vector<8x128xf32>
    %115 = arith.negf %114 : vector<8x128xf32>
    %116 = math.exp %115 : vector<8x128xf32>
    %cst_38 = arith.constant 1.000000e+00 : f32
    %117 = vector.broadcast %cst_38 : f32 to vector<8x128xf32>
    %118 = arith.addf %117, %116 : vector<8x128xf32>
    %119 = arith.divf %117, %118 : vector<8x128xf32>
    %120 = vector.extract_strided_slice %111 {offsets = [0, 128], sizes = [8, 128], strides = [1, 1]} : vector<8x384xf32> to vector<8x128xf32>
    %121 = vector.extract_strided_slice %110 {offsets = [0, 128], sizes = [8, 128], strides = [1, 1]} : vector<8x384xf32> to vector<8x128xf32>
    %122 = arith.addf %120, %121 : vector<8x128xf32>
    %123 = arith.negf %122 : vector<8x128xf32>
    %124 = math.exp %123 : vector<8x128xf32>
    %cst_39 = arith.constant 1.000000e+00 : f32
    %125 = vector.broadcast %cst_39 : f32 to vector<8x128xf32>
    %126 = arith.addf %125, %124 : vector<8x128xf32>
    %127 = arith.divf %125, %126 : vector<8x128xf32>
    %128 = vector.extract_strided_slice %111 {offsets = [0, 256], sizes = [8, 128], strides = [1, 1]} : vector<8x384xf32> to vector<8x128xf32>
    %129 = vector.extract_strided_slice %110 {offsets = [0, 256], sizes = [8, 128], strides = [1, 1]} : vector<8x384xf32> to vector<8x128xf32>
    %130 = vector.broadcast %10 : vector<1x128xf32> to vector<8x128xf32>
    %131 = arith.addf %129, %130 : vector<8x128xf32>
    %132 = arith.mulf %119, %131 : vector<8x128xf32>
    %133 = arith.addf %128, %132 : vector<8x128xf32>
    %134 = math.tanh %133 : vector<8x128xf32>
    %cst_40 = arith.constant 1.000000e+00 : f32
    %135 = vector.broadcast %cst_40 : f32 to vector<8x128xf32>
    %136 = arith.subf %135, %127 : vector<8x128xf32>
    %137 = arith.mulf %136, %134 : vector<8x128xf32>
    %138 = arith.mulf %127, %107 : vector<8x128xf32>
    %139 = arith.addf %137, %138 : vector<8x128xf32>
    %140 = arith.truncf %139 : vector<8x128xf32> to vector<8x128xbf16>
    %c0_41 = arith.constant 0 : index
    %c0_42 = arith.constant 0 : index
    %141 = vector.load %arg3[%c0_41, %c0_42] : memref<128x384xbf16, #tpu.memory_space<vmem>>, vector<128x384xbf16>
    %cst_43 = arith.constant dense<0.000000e+00> : vector<8x384xf32>
    %142 = tpu.matmul %140, %141, %cst_43 {dimension_numbers = #tpu.dot_dimension_numbers<[1], [0], [0], [1], [0, 0, 1, 1], [], []>} : vector<8x128xbf16>, vector<128x384xbf16>, vector<8x384xf32> -> vector<8x384xf32>
    %c32 = arith.constant 32 : index
    %c0_44 = arith.constant 0 : index
    %143 = vector.load %arg7[%c32, %c0_44] : memref<64x384xf32, #tpu.memory_space<vmem>>, vector<8x384xf32>
    %144 = vector.extract_strided_slice %143 {offsets = [0, 0], sizes = [8, 128], strides = [1, 1]} : vector<8x384xf32> to vector<8x128xf32>
    %145 = vector.extract_strided_slice %142 {offsets = [0, 0], sizes = [8, 128], strides = [1, 1]} : vector<8x384xf32> to vector<8x128xf32>
    %146 = arith.addf %144, %145 : vector<8x128xf32>
    %147 = arith.negf %146 : vector<8x128xf32>
    %148 = math.exp %147 : vector<8x128xf32>
    %cst_45 = arith.constant 1.000000e+00 : f32
    %149 = vector.broadcast %cst_45 : f32 to vector<8x128xf32>
    %150 = arith.addf %149, %148 : vector<8x128xf32>
    %151 = arith.divf %149, %150 : vector<8x128xf32>
    %152 = vector.extract_strided_slice %143 {offsets = [0, 128], sizes = [8, 128], strides = [1, 1]} : vector<8x384xf32> to vector<8x128xf32>
    %153 = vector.extract_strided_slice %142 {offsets = [0, 128], sizes = [8, 128], strides = [1, 1]} : vector<8x384xf32> to vector<8x128xf32>
    %154 = arith.addf %152, %153 : vector<8x128xf32>
    %155 = arith.negf %154 : vector<8x128xf32>
    %156 = math.exp %155 : vector<8x128xf32>
    %cst_46 = arith.constant 1.000000e+00 : f32
    %157 = vector.broadcast %cst_46 : f32 to vector<8x128xf32>
    %158 = arith.addf %157, %156 : vector<8x128xf32>
    %159 = arith.divf %157, %158 : vector<8x128xf32>
    %160 = vector.extract_strided_slice %143 {offsets = [0, 256], sizes = [8, 128], strides = [1, 1]} : vector<8x384xf32> to vector<8x128xf32>
    %161 = vector.extract_strided_slice %142 {offsets = [0, 256], sizes = [8, 128], strides = [1, 1]} : vector<8x384xf32> to vector<8x128xf32>
    %162 = vector.broadcast %10 : vector<1x128xf32> to vector<8x128xf32>
    %163 = arith.addf %161, %162 : vector<8x128xf32>
    %164 = arith.mulf %151, %163 : vector<8x128xf32>
    %165 = arith.addf %160, %164 : vector<8x128xf32>
    %166 = math.tanh %165 : vector<8x128xf32>
    %cst_47 = arith.constant 1.000000e+00 : f32
    %167 = vector.broadcast %cst_47 : f32 to vector<8x128xf32>
    %168 = arith.subf %167, %159 : vector<8x128xf32>
    %169 = arith.mulf %168, %166 : vector<8x128xf32>
    %170 = arith.mulf %159, %139 : vector<8x128xf32>
    %171 = arith.addf %169, %170 : vector<8x128xf32>
    %172 = arith.truncf %171 : vector<8x128xf32> to vector<8x128xbf16>
    %c0_48 = arith.constant 0 : index
    %c0_49 = arith.constant 0 : index
    %173 = vector.load %arg3[%c0_48, %c0_49] : memref<128x384xbf16, #tpu.memory_space<vmem>>, vector<128x384xbf16>
    %cst_50 = arith.constant dense<0.000000e+00> : vector<8x384xf32>
    %174 = tpu.matmul %172, %173, %cst_50 {dimension_numbers = #tpu.dot_dimension_numbers<[1], [0], [0], [1], [0, 0, 1, 1], [], []>} : vector<8x128xbf16>, vector<128x384xbf16>, vector<8x384xf32> -> vector<8x384xf32>
    %c40 = arith.constant 40 : index
    %c0_51 = arith.constant 0 : index
    %175 = vector.load %arg7[%c40, %c0_51] : memref<64x384xf32, #tpu.memory_space<vmem>>, vector<8x384xf32>
    %176 = vector.extract_strided_slice %175 {offsets = [0, 0], sizes = [8, 128], strides = [1, 1]} : vector<8x384xf32> to vector<8x128xf32>
    %177 = vector.extract_strided_slice %174 {offsets = [0, 0], sizes = [8, 128], strides = [1, 1]} : vector<8x384xf32> to vector<8x128xf32>
    %178 = arith.addf %176, %177 : vector<8x128xf32>
    %179 = arith.negf %178 : vector<8x128xf32>
    %180 = math.exp %179 : vector<8x128xf32>
    %cst_52 = arith.constant 1.000000e+00 : f32
    %181 = vector.broadcast %cst_52 : f32 to vector<8x128xf32>
    %182 = arith.addf %181, %180 : vector<8x128xf32>
    %183 = arith.divf %181, %182 : vector<8x128xf32>
    %184 = vector.extract_strided_slice %175 {offsets = [0, 128], sizes = [8, 128], strides = [1, 1]} : vector<8x384xf32> to vector<8x128xf32>
    %185 = vector.extract_strided_slice %174 {offsets = [0, 128], sizes = [8, 128], strides = [1, 1]} : vector<8x384xf32> to vector<8x128xf32>
    %186 = arith.addf %184, %185 : vector<8x128xf32>
    %187 = arith.negf %186 : vector<8x128xf32>
    %188 = math.exp %187 : vector<8x128xf32>
    %cst_53 = arith.constant 1.000000e+00 : f32
    %189 = vector.broadcast %cst_53 : f32 to vector<8x128xf32>
    %190 = arith.addf %189, %188 : vector<8x128xf32>
    %191 = arith.divf %189, %190 : vector<8x128xf32>
    %192 = vector.extract_strided_slice %175 {offsets = [0, 256], sizes = [8, 128], strides = [1, 1]} : vector<8x384xf32> to vector<8x128xf32>
    %193 = vector.extract_strided_slice %174 {offsets = [0, 256], sizes = [8, 128], strides = [1, 1]} : vector<8x384xf32> to vector<8x128xf32>
    %194 = vector.broadcast %10 : vector<1x128xf32> to vector<8x128xf32>
    %195 = arith.addf %193, %194 : vector<8x128xf32>
    %196 = arith.mulf %183, %195 : vector<8x128xf32>
    %197 = arith.addf %192, %196 : vector<8x128xf32>
    %198 = math.tanh %197 : vector<8x128xf32>
    %cst_54 = arith.constant 1.000000e+00 : f32
    %199 = vector.broadcast %cst_54 : f32 to vector<8x128xf32>
    %200 = arith.subf %199, %191 : vector<8x128xf32>
    %201 = arith.mulf %200, %198 : vector<8x128xf32>
    %202 = arith.mulf %191, %171 : vector<8x128xf32>
    %203 = arith.addf %201, %202 : vector<8x128xf32>
    %204 = arith.truncf %203 : vector<8x128xf32> to vector<8x128xbf16>
    %c0_55 = arith.constant 0 : index
    %c0_56 = arith.constant 0 : index
    %205 = vector.load %arg3[%c0_55, %c0_56] : memref<128x384xbf16, #tpu.memory_space<vmem>>, vector<128x384xbf16>
    %cst_57 = arith.constant dense<0.000000e+00> : vector<8x384xf32>
    %206 = tpu.matmul %204, %205, %cst_57 {dimension_numbers = #tpu.dot_dimension_numbers<[1], [0], [0], [1], [0, 0, 1, 1], [], []>} : vector<8x128xbf16>, vector<128x384xbf16>, vector<8x384xf32> -> vector<8x384xf32>
    %c48 = arith.constant 48 : index
    %c0_58 = arith.constant 0 : index
    %207 = vector.load %arg7[%c48, %c0_58] : memref<64x384xf32, #tpu.memory_space<vmem>>, vector<8x384xf32>
    %208 = vector.extract_strided_slice %207 {offsets = [0, 0], sizes = [8, 128], strides = [1, 1]} : vector<8x384xf32> to vector<8x128xf32>
    %209 = vector.extract_strided_slice %206 {offsets = [0, 0], sizes = [8, 128], strides = [1, 1]} : vector<8x384xf32> to vector<8x128xf32>
    %210 = arith.addf %208, %209 : vector<8x128xf32>
    %211 = arith.negf %210 : vector<8x128xf32>
    %212 = math.exp %211 : vector<8x128xf32>
    %cst_59 = arith.constant 1.000000e+00 : f32
    %213 = vector.broadcast %cst_59 : f32 to vector<8x128xf32>
    %214 = arith.addf %213, %212 : vector<8x128xf32>
    %215 = arith.divf %213, %214 : vector<8x128xf32>
    %216 = vector.extract_strided_slice %207 {offsets = [0, 128], sizes = [8, 128], strides = [1, 1]} : vector<8x384xf32> to vector<8x128xf32>
    %217 = vector.extract_strided_slice %206 {offsets = [0, 128], sizes = [8, 128], strides = [1, 1]} : vector<8x384xf32> to vector<8x128xf32>
    %218 = arith.addf %216, %217 : vector<8x128xf32>
    %219 = arith.negf %218 : vector<8x128xf32>
    %220 = math.exp %219 : vector<8x128xf32>
    %cst_60 = arith.constant 1.000000e+00 : f32
    %221 = vector.broadcast %cst_60 : f32 to vector<8x128xf32>
    %222 = arith.addf %221, %220 : vector<8x128xf32>
    %223 = arith.divf %221, %222 : vector<8x128xf32>
    %224 = vector.extract_strided_slice %207 {offsets = [0, 256], sizes = [8, 128], strides = [1, 1]} : vector<8x384xf32> to vector<8x128xf32>
    %225 = vector.extract_strided_slice %206 {offsets = [0, 256], sizes = [8, 128], strides = [1, 1]} : vector<8x384xf32> to vector<8x128xf32>
    %226 = vector.broadcast %10 : vector<1x128xf32> to vector<8x128xf32>
    %227 = arith.addf %225, %226 : vector<8x128xf32>
    %228 = arith.mulf %215, %227 : vector<8x128xf32>
    %229 = arith.addf %224, %228 : vector<8x128xf32>
    %230 = math.tanh %229 : vector<8x128xf32>
    %cst_61 = arith.constant 1.000000e+00 : f32
    %231 = vector.broadcast %cst_61 : f32 to vector<8x128xf32>
    %232 = arith.subf %231, %223 : vector<8x128xf32>
    %233 = arith.mulf %232, %230 : vector<8x128xf32>
    %234 = arith.mulf %223, %203 : vector<8x128xf32>
    %235 = arith.addf %233, %234 : vector<8x128xf32>
    %236 = arith.truncf %235 : vector<8x128xf32> to vector<8x128xbf16>
    %c0_62 = arith.constant 0 : index
    %c0_63 = arith.constant 0 : index
    %237 = vector.load %arg3[%c0_62, %c0_63] : memref<128x384xbf16, #tpu.memory_space<vmem>>, vector<128x384xbf16>
    %cst_64 = arith.constant dense<0.000000e+00> : vector<8x384xf32>
    %238 = tpu.matmul %236, %237, %cst_64 {dimension_numbers = #tpu.dot_dimension_numbers<[1], [0], [0], [1], [0, 0, 1, 1], [], []>} : vector<8x128xbf16>, vector<128x384xbf16>, vector<8x384xf32> -> vector<8x384xf32>
    %c56 = arith.constant 56 : index
    %c0_65 = arith.constant 0 : index
    %239 = vector.load %arg7[%c56, %c0_65] : memref<64x384xf32, #tpu.memory_space<vmem>>, vector<8x384xf32>
    %240 = vector.extract_strided_slice %239 {offsets = [0, 0], sizes = [8, 128], strides = [1, 1]} : vector<8x384xf32> to vector<8x128xf32>
    %241 = vector.extract_strided_slice %238 {offsets = [0, 0], sizes = [8, 128], strides = [1, 1]} : vector<8x384xf32> to vector<8x128xf32>
    %242 = arith.addf %240, %241 : vector<8x128xf32>
    %243 = arith.negf %242 : vector<8x128xf32>
    %244 = math.exp %243 : vector<8x128xf32>
    %cst_66 = arith.constant 1.000000e+00 : f32
    %245 = vector.broadcast %cst_66 : f32 to vector<8x128xf32>
    %246 = arith.addf %245, %244 : vector<8x128xf32>
    %247 = arith.divf %245, %246 : vector<8x128xf32>
    %248 = vector.extract_strided_slice %239 {offsets = [0, 128], sizes = [8, 128], strides = [1, 1]} : vector<8x384xf32> to vector<8x128xf32>
    %249 = vector.extract_strided_slice %238 {offsets = [0, 128], sizes = [8, 128], strides = [1, 1]} : vector<8x384xf32> to vector<8x128xf32>
    %250 = arith.addf %248, %249 : vector<8x128xf32>
    %251 = arith.negf %250 : vector<8x128xf32>
    %252 = math.exp %251 : vector<8x128xf32>
    %cst_67 = arith.constant 1.000000e+00 : f32
    %253 = vector.broadcast %cst_67 : f32 to vector<8x128xf32>
    %254 = arith.addf %253, %252 : vector<8x128xf32>
    %255 = arith.divf %253, %254 : vector<8x128xf32>
    %256 = vector.extract_strided_slice %239 {offsets = [0, 256], sizes = [8, 128], strides = [1, 1]} : vector<8x384xf32> to vector<8x128xf32>
    %257 = vector.extract_strided_slice %238 {offsets = [0, 256], sizes = [8, 128], strides = [1, 1]} : vector<8x384xf32> to vector<8x128xf32>
    %258 = vector.broadcast %10 : vector<1x128xf32> to vector<8x128xf32>
    %259 = arith.addf %257, %258 : vector<8x128xf32>
    %260 = arith.mulf %247, %259 : vector<8x128xf32>
    %261 = arith.addf %256, %260 : vector<8x128xf32>
    %262 = math.tanh %261 : vector<8x128xf32>
    %cst_68 = arith.constant 1.000000e+00 : f32
    %263 = vector.broadcast %cst_68 : f32 to vector<8x128xf32>
    %264 = arith.subf %263, %255 : vector<8x128xf32>
    %265 = arith.mulf %264, %262 : vector<8x128xf32>
    %266 = arith.mulf %255, %235 : vector<8x128xf32>
    %267 = arith.addf %265, %266 : vector<8x128xf32>
    %c0_69 = arith.constant 0 : index
    %c0_70 = arith.constant 0 : index
    %268 = vector.load %arg6[%c0_69, %c0_70] : memref<8x128xf32, #tpu.memory_space<vmem>>, vector<8x128xf32>
    tpu.vector_store %arg6[%c0_69, %c0_70], %267 {strides = array<i32>} : memref<8x128xf32, #tpu.memory_space<vmem>>, vector<8x128xf32>,
    return
  }
  func.func @transform_0(%arg0: i32) -> (i32, i32) {
    %c0_i32 = arith.constant 0 : i32
    %c0_i32_0 = arith.constant 0 : i32
    return %arg0, %c0_i32 : i32, i32
  }
  func.func @transform_1(%arg0: i32) -> (i32, i32) {
    %c0_i32 = arith.constant 0 : i32
    %c0_i32_0 = arith.constant 0 : i32
    %c0_i32_1 = arith.constant 0 : i32
    return %c0_i32, %c0_i32_0 : i32, i32
  }
  func.func @transform_2(%arg0: i32) -> (i32, i32) {
    %c0_i32 = arith.constant 0 : i32
    %c0_i32_0 = arith.constant 0 : i32
    %c0_i32_1 = arith.constant 0 : i32
    return %c0_i32, %c0_i32_0 : i32, i32
  }
  func.func @transform_3(%arg0: i32) -> (i32, i32) {
    %c0_i32 = arith.constant 0 : i32
    %c0_i32_0 = arith.constant 0 : i32
    %c0_i32_1 = arith.constant 0 : i32
    return %c0_i32, %c0_i32_0 : i32, i32
  }
  func.func @transform_4(%arg0: i32) -> (i32, i32) {
    %c0_i32 = arith.constant 0 : i32
    %c0_i32_0 = arith.constant 0 : i32
    %c0_i32_1 = arith.constant 0 : i32
    return %c0_i32, %c0_i32_0 : i32, i32
  }
  func.func @transform_5(%arg0: i32) -> (i32, i32) {
    %c0_i32 = arith.constant 0 : i32
    %c0_i32_0 = arith.constant 0 : i32
    %c0_i32_1 = arith.constant 0 : i32
    return %c0_i32, %c0_i32_0 : i32, i32
  }
}

</mosaic_0001>

<bundles_post_ra>
// kernel: question_encoder_forward.1
= control target key start
LH: loop header
LB: loop body
LE: loop exit
PB: predicated region body
PF: predicated region fallthrough
CT: control target
= control target key end

     0   :  { %10 = vsyncpa [#allocation4], 0  ;;  %s1451_s21 = smov [#allocation3]   ;;  %s1452_s23 = smov 192   ;;  %s1924_s0 = inlined_call_operand.vmem [shape: bf16[64,32], index: 0, kind: input, shape index: {}]   ;;  %s1925_s1 = inlined_call_operand.vmem [shape: bf16[32,384], index: 1, kind: input, shape index: {}]   ;;  %s1926_s2 = inlined_call_operand.hbm [shape: bf16[128,384], index: 2, kind: input, shape index: {}]   ;;  %s1927_s3 = inlined_call_operand.vmem [shape: f32[1,384], index: 3, kind: input, shape index: {}]   ;;  %s1928_s4 = inlined_call_operand.vmem [shape: f32[1,128], index: 4, kind: input, shape index: {}]   ;;  %s1929_s5 = inlined_call_operand.vmem [shape: f32[8,128], index: 5, kind: output, shape index: {}]  }
   0x1   :  { %s19_s20 = sshll.u32 %s1926_s2, 4  ;;  %s21_s22 = sshll.u32 %s1451_s21, 4  ;;  %s20_s20 = int_to_ptr.hbm [resolvable:$true] %s19_s20  ;;  %s22_s22 = int_to_ptr.vmem [resolvable:$true] %s21_s22 }
   0x2   :  { %s1453_s24 = smov 12  }
   0x3   :  { %27 = dma.hbm_to_vmem [thread:$0]  %s20_s20, 3072, %s22_s22, [#allocation4], %s1452_s23, %s1452_s23, %s1453_s24  }
   0x4   :  { %1449 = dma.done.wait [#allocation4], 3072  }
   0x5   :  { %1450 = vsyncadd [#allocation4], 4294964224  ;;  %v1171_v0 = vld [vmem:[%s1925_s1 + $0x18] sm:$0xf]  ;;  %v1309_v1 = vld [vmem:[%s1925_s1 + $0x20] sm:$0xf0] }
   0x6   :  { %v1279_v2 = vld [vmem:[#allocation3 + $0xa8] sm:$0xf]  ;;  %v1172_v3 = vor.u32 %v1309_v1, %v1171_v0  ;;  %v1337_v4 = vld [vmem:[#allocation3 + $0xb0] sm:$0xf0]  ;;  %v1159_v5 = vld [vmem:[%s1925_s1] sm:$0xf] }
   0x7   :  { %v1306_v6 = vld [vmem:[%s1925_s1 + $0x8] sm:$0xf0]  ;;  %v1500_v7 = vor.u32 %v1337_v4, %v1279_v2  ;;  %v1267_v8 = vld [vmem:[#allocation3 + $0x90] sm:$0xf]  ;;  %v1334_v9 = vld [vmem:[#allocation3 + $0x98] sm:$0xf0] }
   0x8   :  { %137 = vmatpush.bf16.msra.mxu0 %v1172_v3  ;;  %v1160_v10 = vor.u32 %v1306_v6, %v1159_v5  ;;  %v1503_v11 = vor.u32 %v1334_v9, %v1267_v8  ;;  %v1255_v12 = vld [vmem:[#allocation3 + $0x78] sm:$0xf]  ;;  %v1331_v13 = vld [vmem:[#allocation3 + $0x80] sm:$0xf0]  ;;  %v1287_v14 = vld [vmem:[#allocation3 + $0xb0] sm:$0xf] }
   0x9   :  { %405 = vmatpush.bf16.msra.mxu3 %v1500_v7  ;;  %v1508_v15 = vld [vmem:[%s1924_s0] sm:$0xff]  ;;  %v1338_v16 = vld [vmem:[#allocation3 + $0xb8] sm:$0xf0]  ;;  %vm118_vm0 = vcmask 261120   ;;  %v1513_v18 = vor.u32 %v1331_v13, %v1255_v12  ;;  %v1275_v19 = vld [vmem:[#allocation3 + $0x98] sm:$0xf] }
   0xa   :  { %v1510_v17 = vor.u32 %v1338_v16, %v1287_v14  ;;  %v1243_v20 = vld [vmem:[#allocation3 + $0x60] sm:$0xf]  ;;  %v1328_v21 = vld [vmem:[#allocation3 + $0x68] sm:$0xf0]  ;;  %v1335_v22 = vld [vmem:[#allocation3 + $0xa0] sm:$0xf0] }
   0xb   :  { %v1518_v23 = vor.u32 %v1335_v22, %v1275_v19  ;;  %v1263_v24 = vld [vmem:[#allocation3 + $0x80] sm:$0xf]  ;;  %v1332_v25 = vld [vmem:[#allocation3 + $0x88] sm:$0xf0]  ;;  %v1521_v26 = vor.u32 %v1328_v21, %v1243_v20  ;;  %v1231_v27 = vld [vmem:[#allocation3 + $0x48] sm:$0xf] }
   0xc   :  { %138 = vmatpush.bf16.msra.mxu0 %v1160_v10  ;;  %v1325_v28 = vld [vmem:[#allocation3 + $0x50] sm:$0xf0]  ;;  %v1524_v29 = vor.u32 %v1332_v25, %v1263_v24  ;;  %v1219_v31 = vld [vmem:[#allocation3 + $0x30] sm:$0xf]  ;;  %v1322_v32 = vld [vmem:[#allocation3 + $0x38] sm:$0xf0] }
   0xd   :  { %406 = vmatpush.bf16.msra.mxu3 %v1503_v11  ;;  %v1527_v30 = vor.u32 %v1325_v28, %v1231_v27  ;;  %v1251_v33 = vld [vmem:[#allocation3 + $0x68] sm:$0xf]  ;;  %v1329_v34 = vld [vmem:[#allocation3 + $0x70] sm:$0xf0]  ;;  %v1308_v35 = vld [vmem:[%s1925_s1 + $0x1c] sm:$0xf]  ;;  %v1539_v39 = vor.u32 %v1322_v32, %v1219_v31 }
   0xe   :  { %v1533_v36 = vor.u32 %v1329_v34, %v1251_v33  ;;  %v1173_v37 = vld [vmem:[%s1925_s1 + $0x24] sm:$0xf0]  ;;  %v1207_v40 = vld [vmem:[#allocation3 + $0x18] sm:$0xf]  ;;  %v1319_v41 = vld [vmem:[#allocation3 + $0x20] sm:$0xf0] }
   0xf   :  { %1181 = vmatmul.msk.bf16.vlgmr.msra.gmra.mxu0 %vm118_vm0, %v1508_v15  ;;  %v1176_v38 = vor.u32 %v1308_v35, %v1173_v37  ;;  %v1305_v42 = vld [vmem:[%s1925_s1 + $0x4] sm:$0xf]  ;;  %v1161_v43 = vld [vmem:[%s1925_s1 + $0xc] sm:$0xf0]  ;;  %v1551_v44 = vld [vmem:[%s1924_s0 + $0x8] sm:$0xff]  ;;  %v1554_v46 = vor.u32 %v1319_v41, %v1207_v40  ;;  %v1454_v13 = vmov 0.0|0.0  }
  0x10   :  { %431 = vmatpush.bf16.msrb.mxu0 %v1510_v17  ;;  %v1164_v45 = vor.u32 %v1305_v42, %v1161_v43  ;;  %v1195_v47 = vld [vmem:[#allocation3] sm:$0xf]  ;;  %v1316_v48 = vld [vmem:[#allocation3 + $0x8] sm:$0xf0]  ;;  %v1239_v49 = vld [vmem:[#allocation3 + $0x50] sm:$0xf] }
  0x11   :  { %407 = vmatpush.bf16.msra.mxu3 %v1513_v18  ;;  %166 = vmatpush.bf16.msra.mxu1 %v1176_v38  ;;  %v1326_v50 = vld [vmem:[#allocation3 + $0x58] sm:$0xf0]  ;;  %v1336_v51 = vld [vmem:[#allocation3 + $0xac] sm:$0xf]  ;;  %v1281_v52 = vld [vmem:[#allocation3 + $0xb4] sm:$0xf0]  ;;  %v1562_v54 = vor.u32 %v1316_v48, %v1195_v47 }
  0x12   :  { %v1558_v53 = vor.u32 %v1326_v50, %v1239_v49  ;;  %v1565_v55 = vor.u32 %v1336_v51, %v1281_v52  ;;  %v1179_v56 = vld [vmem:[%s1925_s1 + $0x20] sm:$0xf]  ;;  %v1310_v57 = vld [vmem:[%s1925_s1 + $0x28] sm:$0xf0]  ;;  %v1227_v58 = vld [vmem:[#allocation3 + $0x38] sm:$0xf] }
  0x13   :  { %v1333_v59 = vld [vmem:[#allocation3 + $0x94] sm:$0xf]  ;;  %v1269_v60 = vld [vmem:[#allocation3 + $0x9c] sm:$0xf0]  ;;  %v1180_v61 = vor.u32 %v1310_v57, %v1179_v56  ;;  %v1323_v62 = vld [vmem:[#allocation3 + $0x40] sm:$0xf0] }
  0x14   :  { %432 = vmatpush.bf16.msrb.mxu0 %v1518_v23  ;;  %v1576_v63 = vor.u32 %v1323_v62, %v1227_v58  ;;  %v1167_v0 = vld [vmem:[%s1925_s1 + $0x8] sm:$0xf]  ;;  %v1307_v1 = vld [vmem:[%s1925_s1 + $0x10] sm:$0xf0]  ;;  %v1215_v2 = vld [vmem:[#allocation3 + $0x20] sm:$0xf]  ;;  %v1586_v3 = vor.u32 %v1333_v59, %v1269_v60 }
  0x15   :  { %408 = vmatpush.bf16.msra.mxu3 %v1521_v26  ;;  %167 = vmatpush.bf16.msra.mxu1 %v1164_v45  ;;  %v1330_v4 = vld [vmem:[#allocation3 + $0x7c] sm:$0xf]  ;;  %v1168_v5 = vor.u32 %v1307_v1, %v1167_v0  ;;  %v1320_v6 = vld [vmem:[#allocation3 + $0x28] sm:$0xf0]  ;;  %v1257_v8 = vld [vmem:[#allocation3 + $0x84] sm:$0xf0] }
  0x16   :  { %195 = vmatpush.bf16.msra.mxu2 %v1180_v61  ;;  %v1589_v9 = vor.u32 %v1320_v6, %v1215_v2  ;;  %v1203_v10 = vld [vmem:[#allocation3 + $0x8] sm:$0xf]  ;;  %v1317_v12 = vld [vmem:[#allocation3 + $0x10] sm:$0xf0]  ;;  %v1594_v14 = vor.u32 %v1330_v4, %v1257_v8  ;;  %v1327_v20 = vld [vmem:[#allocation3 + $0x64] sm:$0xf] }
  0x17   :  { %v1597_v16 = vor.u32 %v1317_v12, %v1203_v10  ;;  %v1313_v19 = vld [vmem:[%s1924_s0 + $0x10] sm:$0xff]  ;;  %v1324_v24 = vld [vmem:[#allocation3 + $0x4c] sm:$0xf]  ;;  %v1233_v25 = vld [vmem:[#allocation3 + $0x54] sm:$0xf0] }
  0x18   :  { %433 = vmatpush.bf16.msrb.mxu0 %v1524_v29  ;;  %1185 = vmatmul.msk.bf16.vlgmr.msra.gmra.mxu1 %vm118_vm0, %v1508_v15  ;;  %v1245_v21 = vld [vmem:[#allocation3 + $0x6c] sm:$0xf0]  ;;  %v1615_v27 = vor.u32 %v1324_v24, %v1233_v25  ;;  %v1221_v28 = vld [vmem:[#allocation3 + $0x3c] sm:$0xf0]  ;;  %v1318_v32 = vld [vmem:[#allocation3 + $0x1c] sm:$0xf] }
  0x19   :  { %409 = vmatpush.bf16.msra.mxu3 %v1527_v30  ;;  %499 = vmatpush.bf16.msrb.mxu1 %v1500_v7  ;;  %v1607_v22 = vor.u32 %v1327_v20, %v1245_v21  ;;  %v1209_v33 = vld [vmem:[#allocation3 + $0x24] sm:$0xf0]  ;;  %v1314_v35 = vld [vmem:[%s1924_s0 + $0x18] sm:$0xff]  ;;  %v1315_v37 = vld [vmem:[#allocation3 + $0x4] sm:$0xf] }
  0x1a   :  { %196 = vmatpush.bf16.msra.mxu2 %v1168_v5  ;;  %v1629_v34 = vor.u32 %v1318_v32, %v1209_v33  ;;  %v1197_v38 = vld [vmem:[#allocation3 + $0xc] sm:$0xf0]  ;;  %v50_v42 = vld [vmem:[%s1927_s3] sm:$0x7] }
  0x1b   :  { %v1641_v40 = vor.u32 %v1315_v37, %v1197_v38  ;;  %v60_v43 = vperm.slane %v50_v42, 0  ;;  %v1712_v5 = vperm.slane %v50_v42, 1 }
  0x1c   :  { %434 = vmatpush.bf16.msrb.mxu0 %v1533_v36 }
  0x1d   :  { %410 = vmatpush.bf16.msra.mxu3 %v1539_v39  ;;  %500 = vmatpush.bf16.msrb.mxu1 %v1503_v11 }
  0x1e   :  { %512 = vmatpush.bf16.msrb.mxu2 %v1565_v55 }
  0x1f   :  { %1182 = vmatmul.msk.bf16.gmra.mxu0 %vm118_vm0, %v1551_v44  ;;  %1189 = vmatmul.msk.bf16.vlgmr.msra.gmra.mxu2 %vm118_vm0, %v1508_v15  ;;  %v1321_v15 = vld [vmem:[#allocation3 + $0x34] sm:$0xf] }
  0x20   :  { %435 = vmatpush.bf16.msrb.mxu0 %v1558_v53  ;;  %v1623_v31 = vor.u32 %v1321_v15, %v1221_v28 }
  0x21   :  { %411 = vmatpush.bf16.msra.mxu3 %v1554_v46  ;;  %501 = vmatpush.bf16.msrb.mxu1 %v1513_v18 }
  0x22   :  { %513 = vmatpush.bf16.msrb.mxu2 %v1586_v3 }
  0x24   :  { %436 = vmatpush.bf16.msrb.mxu0 %v1576_v63 }
  0x25   :  { %412 = vmatpush.bf16.msra.mxu3 %v1562_v54  ;;  %502 = vmatpush.bf16.msrb.mxu1 %v1521_v26 }
  0x26   :  { %514 = vmatpush.bf16.msrb.mxu2 %v1594_v14 }
  0x28   :  { %413 = vmatmul.bf16.vlgmr.msra.gmra.mxu3 %v1454_v13  ;;  %437 = vmatpush.bf16.msrb.mxu0 %v1589_v9 }
  0x29   :  { %418 = vmatpush.bf16.msrb.mxu3 %v1565_v55  ;;  %503 = vmatpush.bf16.msrb.mxu1 %v1527_v30 }
  0x2a   :  { %1186 = vmatmul.msk.bf16.gmra.mxu1 %vm118_vm0, %v1551_v44  ;;  %515 = vmatpush.bf16.msrb.mxu2 %v1607_v22 }
  0x2c   :  { %438 = vmatpush.bf16.msrb.mxu0 %v1597_v16 }
  0x2d   :  { %419 = vmatpush.bf16.msrb.mxu3 %v1586_v3  ;;  %504 = vmatpush.bf16.msrb.mxu1 %v1539_v39 }
  0x2e   :  { %516 = vmatpush.bf16.msrb.mxu2 %v1615_v27 }
  0x2f   :  { %1183 = vmatmul.msk.bf16.gmra.mxu0 %vm118_vm0, %v1313_v19  ;;  %1190 = vmatmul.msk.bf16.gmra.mxu2 %vm118_vm0, %v1551_v44 }
  0x30   :  { %590 = vmatpush.bf16.msra.mxu0 %v1500_v7 }
  0x31   :  { %420 = vmatpush.bf16.msrb.mxu3 %v1594_v14  ;;  %505 = vmatpush.bf16.msrb.mxu1 %v1554_v46 }
  0x32   :  { %517 = vmatpush.bf16.msrb.mxu2 %v1623_v31 }
  0x34   :  { %591 = vmatpush.bf16.msra.mxu0 %v1503_v11 }
  0x35   :  { %421 = vmatpush.bf16.msrb.mxu3 %v1607_v22  ;;  %506 = vmatpush.bf16.msrb.mxu1 %v1562_v54 }
  0x36   :  { %518 = vmatpush.bf16.msrb.mxu2 %v1629_v34 }
  0x38   :  { %592 = vmatpush.bf16.msra.mxu0 %v1513_v18 }
  0x39   :  { %422 = vmatpush.bf16.msrb.mxu3 %v1615_v27  ;;  %603 = vmatpush.bf16.msra.mxu1 %v1565_v55 }
  0x3a   :  { %1187 = vmatmul.msk.bf16.gmra.mxu1 %vm118_vm0, %v1313_v19  ;;  %519 = vmatpush.bf16.msrb.mxu2 %v1641_v40 }
  0x3c   :  { %593 = vmatpush.bf16.msra.mxu0 %v1521_v26 }
  0x3d   :  { %423 = vmatpush.bf16.msrb.mxu3 %v1623_v31  ;;  %604 = vmatpush.bf16.msra.mxu1 %v1586_v3 }
  0x3e   :  { %616 = vmatpush.bf16.msra.mxu2 %v1510_v17 }
  0x3f   :  { %1184 = vmatmul.msk.bf16.gmra.mxu0 %vm118_vm0, %v1314_v35  ;;  %1191 = vmatmul.msk.bf16.gmra.mxu2 %vm118_vm0, %v1313_v19 }
  0x40   :  { %594 = vmatpush.bf16.msra.mxu0 %v1527_v30 }
  0x41   :  { %424 = vmatpush.bf16.msrb.mxu3 %v1629_v34  ;;  %605 = vmatpush.bf16.msra.mxu1 %v1594_v14 }
  0x42   :  { %617 = vmatpush.bf16.msra.mxu2 %v1518_v23 }
  0x44   :  { %595 = vmatpush.bf16.msra.mxu0 %v1539_v39 }
  0x45   :  { %425 = vmatpush.bf16.msrb.mxu3 %v1641_v40  ;;  %606 = vmatpush.bf16.msra.mxu1 %v1607_v22 }
  0x46   :  { %618 = vmatpush.bf16.msra.mxu2 %v1524_v29 }
  0x48   :  { %426 = vmatmul.bf16.vlgmr.msrb.gmra.mxu3 %v1454_v13  ;;  %596 = vmatpush.bf16.msra.mxu0 %v1554_v46 }
  0x49   :  { %525 = vmatpush.bf16.msra.mxu3 %v1510_v17  ;;  %607 = vmatpush.bf16.msra.mxu1 %v1615_v27 }
  0x4a   :  { %1188 = vmatmul.msk.bf16.gmra.mxu1 %vm118_vm0, %v1314_v35  ;;  %619 = vmatpush.bf16.msra.mxu2 %v1533_v36 }
  0x4c   :  { %597 = vmatpush.bf16.msra.mxu0 %v1562_v54 }
  0x4d   :  { %526 = vmatpush.bf16.msra.mxu3 %v1518_v23  ;;  %608 = vmatpush.bf16.msra.mxu1 %v1623_v31 }
  0x4e   :  { %620 = vmatpush.bf16.msra.mxu2 %v1558_v53 }
  0x4f   :  { %439 = vmatmul.bf16.vlgmr.msrb.gmra.mxu0 %v1454_v13  ;;  %1192 = vmatmul.msk.bf16.gmra.mxu2 %vm118_vm0, %v1314_v35  ;;  %v1720_v35 = vld [vmem:[%s1928_s4] ss:$0 sm:$0xff] }
  0x50   :  { %694 = vmatpush.bf16.msrb.mxu0 %v1565_v55 }
  0x51   :  { %527 = vmatpush.bf16.msra.mxu3 %v1524_v29  ;;  %609 = vmatpush.bf16.msra.mxu1 %v1629_v34 }
  0x52   :  { %621 = vmatpush.bf16.msra.mxu2 %v1576_v63 }
  0x54   :  { %695 = vmatpush.bf16.msrb.mxu0 %v1586_v3 }
  0x55   :  { %528 = vmatpush.bf16.msra.mxu3 %v1533_v36  ;;  %610 = vmatpush.bf16.msra.mxu1 %v1641_v40 }
  0x56   :  { %622 = vmatpush.bf16.msra.mxu2 %v1589_v9 }
  0x58   :  { %696 = vmatpush.bf16.msrb.mxu0 %v1594_v14 }
  0x59   :  { %529 = vmatpush.bf16.msra.mxu3 %v1558_v53 }
  0x5a   :  { %623 = vmatpush.bf16.msra.mxu2 %v1597_v16 }
  0x5c   :  { %697 = vmatpush.bf16.msrb.mxu0 %v1607_v22 }
  0x5d   :  { %530 = vmatpush.bf16.msra.mxu3 %v1576_v63 }
  0x60   :  { %698 = vmatpush.bf16.msrb.mxu0 %v1615_v27 }
  0x61   :  { %531 = vmatpush.bf16.msra.mxu3 %v1589_v9 }
  0x64   :  { %699 = vmatpush.bf16.msrb.mxu0 %v1623_v31 }
  0x65   :  { %532 = vmatpush.bf16.msra.mxu3 %v1597_v16 }
  0x68   :  { %700 = vmatpush.bf16.msrb.mxu0 %v1629_v34 }
  0x69   :  { %681 = vmatpush.bf16.msrb.mxu3 %v1500_v7 }
  0x6c   :  { %701 = vmatpush.bf16.msrb.mxu0 %v1641_v40 }
  0x6d   :  { %682 = vmatpush.bf16.msrb.mxu3 %v1503_v11 }
  0x71   :  { %683 = vmatpush.bf16.msrb.mxu3 %v1513_v18 }
  0x75   :  { %684 = vmatpush.bf16.msrb.mxu3 %v1521_v26 }
  0x79   :  { %685 = vmatpush.bf16.msrb.mxu3 %v1527_v30 }
  0x7d   :  { %686 = vmatpush.bf16.msrb.mxu3 %v1539_v39 }
  0x81   :  { %687 = vmatpush.bf16.msrb.mxu3 %v1554_v46 }
  0x85   :  { %688 = vmatpush.bf16.msrb.mxu3 %v1562_v54 }
  0x8c   :  { %v140_v41 = vpop.f32.mrf.mxu0 }
  0x8d   :  { %v141_v51 = vadd.f32 %v140_v41, %v60_v43 }
  0x94   :  { %v142_v44 = vpop.f32.mrf.mxu0 }
  0x95   :  { %v1700_v45 = vadd.f32 %v142_v44, %v60_v43  ;;  %v169_v8 = vpop.f32.mrf.mxu1 }
  0x96   :  { %v170_v12 = vadd.f32 %v169_v8, %v1712_v5 }
  0x9c   :  { %v145_v47 = vpop.f32.mrf.mxu0 }
  0x9d   :  { %v1702_v48 = vadd.f32 %v145_v47, %v60_v43 }
  0xa4   :  { %v147_v49 = vpop.f32.mrf.mxu0 }
  0xa5   :  { %v1704_v50 = vadd.f32 %v147_v49, %v60_v43 }
  0xab   :  { %v414_v52 = vpop.f32.mrf.mxu3 }
  0xac   :  { %v447_v56 = vadd.f32 %v414_v52, %v141_v51  ;;  %v150_v57 = vpop.f32.mrf.mxu0  ;;  %v1723_v51 = vperm.slane %v50_v42, 2 }
  0xad   :  { %v1706_v58 = vadd.f32 %v150_v57, %v60_v43 }
  0xae   :  { %v1289_v59 = vmul.f32 -1.442695, %v447_v56  ;;  %v198_v56 = vpop.f32.mrf.mxu2 }
  0xb0   :  { %1344 = vpow2.f32 %v1289_v59 }
  0xb3   :  { %v416_v60 = vpop.f32.mrf.mxu3 }
  0xb4   :  { %v152_v61 = vpop.f32.mrf.mxu0  ;;  %v199_v60 = vadd.f32 %v198_v56, %v1723_v51 }
  0xb5   :  { %v1708_v62 = vadd.f32 %v152_v61, %v60_v43 }
  0xb6   :  { %v1345_v0 = vpop.eup %1344 }
  0xb7   :  { %v451_v1 = vadd.f32 1.0, %v1345_v0 }
  0xb9   :  { %1346 = vrcp.f32 %v451_v1  ;;  %v463_v38 = vand.u32 2147483648, %v451_v1  ;;  %vm457_vm2 = vweird.f32 %v451_v1 }
  0xbb   :  { %v464_v52 = vor.u32 1.1754944e-38, %v463_v38 }
  0xbc   :  { %v155_v2 = vpop.f32.mrf.mxu0 }
  0xbd   :  { %v1710_v4 = vadd.f32 %v155_v2, %v60_v43 }
  0xbf   :  { %1930 = vst [vmem:[#allocation6_spill] sm:$0xff] %v1710_v4  ;;  %v1347_v6 = vpop.eup %1346 }
  0xc0   :  { %v453_v19 = vmul.f32 %v1347_v6, %v451_v1  ;;  %vm458_vm1 = vweird.f32 %v1347_v6 }
  0xc1   :  { %vm459_vm3 = vmor %vm457_vm2, %vm458_vm1 }
  0xc2   :  { %v454_v24 = vsub.f32 1.0, %v453_v19 }
  0xc4   :  { %v157_v10 = vpop.f32.mrf.mxu0  ;;  %v455_v28 = vmul.f32 %v1347_v6, %v454_v24 }
  0xc5   :  { %v1715_v13 = vadd.f32 %v157_v10, %v60_v43  ;;  %v461_v43 = vand.u32 2147483647, %v451_v1 }
  0xc6   :  { %v456_v33 = vadd.f32 %v1347_v6, %v455_v28 }
  0xc7   :  { %1931 = vst [vmem:[#allocation7_spill] sm:$0xff] %v1715_v13  ;;  %vm462_vm4 = vcmp.eq.f32.partialorder %v461_v43, 8.507059e+37 }
  0xc8   :  { %v460_v47 = vsel %vm459_vm3, %v1347_v6, %v456_v33  ;;  %v171_v33 = vpop.f32.mrf.mxu1 }
  0xc9   :  { %v465_v57 = vsel %vm462_vm4, %v464_v52, %v460_v47 }
  0xcb   :  { %v427_v20 = vpop.f32.mrf.mxu3 }
  0xcc   :  { %v467_v21 = vadd.f32 %v427_v20, %v170_v12  ;;  %v440_v15 = vpop.f32.mrf.mxu0 }
  0xcd   :  { %v490_v49 = vadd.f32 %v1720_v35, %v440_v15 }
  0xce   :  { %v1290_v25 = vmul.f32 -1.442695, %v467_v21 }
  0xcf   :  { %v491_v59 = vmul.f32 %v490_v49, %v465_v57 }
  0xd0   :  { %1348 = vpow2.f32 %v1290_v25  ;;  %v1754_v38 = vpop.f32.mrf.mxu1 }
  0xd1   :  { %v492_v2 = vadd.f32 %v491_v59, %v199_v60 }
  0xd3   :  { %v429_v32 = vpop.f32.mrf.mxu3 }
  0xd4   :  { %v442_v44 = vpop.f32.mrf.mxu0 }
  0xd6   :  { %v1349_v37 = vpop.eup %1348 }
  0xd7   :  { %v471_v41 = vadd.f32 1.0, %v1349_v37  ;;  %v200_v37 = vpop.f32.mrf.mxu2 }
  0xd8   :  { %v1758_v43 = vpop.f32.mrf.mxu1 }
  0xd9   :  { %1350 = vrcp.f32 %v471_v41  ;;  %v483_v1 = vand.u32 2147483648, %v471_v41  ;;  %v481_v12 = vand.u32 2147483647, %v471_v41  ;;  %vm477_vm6 = vweird.f32 %v471_v41 }
  0xda   :  { %1352 = vtanh.f32 %v492_v2 }
  0xdb   :  { %v484_v42 = vor.u32 1.1754944e-38, %v483_v1  ;;  %vm482_vm8 = vcmp.eq.f32.partialorder %v481_v12, 8.507059e+37  ;;  %v172_v1 = vadd.f32 %v171_v33, %v1712_v5 }
  0xdf   :  { %v1351_v61 = vpop.eup %1350 }
  0xe0   :  { %v473_v0 = vmul.f32 %v1351_v61, %v471_v41  ;;  %vm478_vm5 = vweird.f32 %v1351_v61  ;;  %v1353_v24 = vpop.eup %1352  ;;  %v1756_v41 = vpop.f32.mrf.mxu2 }
  0xe1   :  { %vm479_vm7 = vmor %vm477_vm6, %vm478_vm5  ;;  %v1762_v47 = vpop.f32.mrf.mxu1 }
  0xe2   :  { %v474_v8 = vsub.f32 1.0, %v473_v0 }
  0xe4   :  { %v475_v10 = vmul.f32 %v1351_v61, %v474_v8 }
  0xe6   :  { %v476_v6 = vadd.f32 %v1351_v61, %v475_v10 }
  0xe8   :  { %v480_v19 = vsel %vm479_vm7, %v1351_v61, %v476_v6  ;;  %v1760_v44 = vpop.f32.mrf.mxu2 }
  0xe9   :  { %v485_v20 = vsel %vm482_vm8, %v484_v42, %v480_v19  ;;  %v1766_v52 = vpop.f32.mrf.mxu1 }
  0xea   :  { %v494_v21 = vsub.f32 1.0, %v485_v20  ;;  %v496_v15 = vmul.f32 0.0, %v485_v20 }
  0xec   :  { %v495_v25 = vmul.f32 %v1353_v24, %v494_v21 }
  0xee   :  { %v1726_v28 = vadd.f32 %v496_v15, %v495_v25 }
  0xf0   :  { %v498_v32 = vpack.c.bf16 %v1726_v28, %v1726_v28  ;;  %v1764_v49 = vpop.f32.mrf.mxu2 }
  0xf1   :  { %v1770_v57 = vpop.f32.mrf.mxu1 }
  0xf2   :  { %507 = vmatmul.bf16.vlgmr.msrb.gmra.mxu1 %v498_v32  ;;  %520 = vmatmul.bf16.vlgmr.msrb.gmra.mxu2 %v498_v32 }
  0xf3   :  { %533 = vmatmul.bf16.vlgmr.msra.gmra.mxu3 %v498_v32  ;;  %707 = vmatpush.bf16.msrb.mxu1 %v1510_v17 }
  0xf4   :  { %772 = vmatpush.bf16.msrb.mxu2 %v1500_v7  ;;  %785 = vmatpush.bf16.msra.mxu3 %v1565_v55 }
  0xf7   :  { %708 = vmatpush.bf16.msrb.mxu1 %v1518_v23 }
  0xf8   :  { %773 = vmatpush.bf16.msrb.mxu2 %v1503_v11  ;;  %786 = vmatpush.bf16.msra.mxu3 %v1586_v3  ;;  %v1768_v56 = vpop.f32.mrf.mxu2 }
  0xf9   :  { %v1774_v60 = vpop.f32.mrf.mxu1 }
  0xfa   :  { %1933 = vst [vmem:[#allocation9_spill] sm:$0xff] %v1774_v60 }
  0xfb   :  { %709 = vmatpush.bf16.msrb.mxu1 %v1524_v29 }
  0xfc   :  { %774 = vmatpush.bf16.msrb.mxu2 %v1513_v18  ;;  %787 = vmatpush.bf16.msra.mxu3 %v1594_v14 }
  0xff   :  { %710 = vmatpush.bf16.msrb.mxu1 %v1533_v36 }
 0x100   :  { %775 = vmatpush.bf16.msrb.mxu2 %v1521_v26  ;;  %788 = vmatpush.bf16.msra.mxu3 %v1607_v22  ;;  %v1772_v59 = vpop.f32.mrf.mxu2 }
 0x101   :  { %1932 = vst [vmem:[#allocation8_spill] sm:$0xff] %v1772_v59 }
 0x103   :  { %711 = vmatpush.bf16.msrb.mxu1 %v1558_v53 }
 0x104   :  { %776 = vmatpush.bf16.msrb.mxu2 %v1527_v30  ;;  %789 = vmatpush.bf16.msra.mxu3 %v1615_v27 }
 0x107   :  { %712 = vmatpush.bf16.msrb.mxu1 %v1576_v63 }
 0x108   :  { %777 = vmatpush.bf16.msrb.mxu2 %v1539_v39  ;;  %790 = vmatpush.bf16.msra.mxu3 %v1623_v31  ;;  %v1776_v61 = vpop.f32.mrf.mxu2 }
 0x109   :  { %1934 = vst [vmem:[#allocation10_spill] sm:$0xff] %v1776_v61 }
 0x10b   :  { %713 = vmatpush.bf16.msrb.mxu1 %v1589_v9 }
 0x10c   :  { %778 = vmatpush.bf16.msrb.mxu2 %v1554_v46  ;;  %791 = vmatpush.bf16.msra.mxu3 %v1629_v34 }
 0x10f   :  { %714 = vmatpush.bf16.msrb.mxu1 %v1597_v16 }
 0x110   :  { %779 = vmatpush.bf16.msrb.mxu2 %v1562_v54  ;;  %792 = vmatpush.bf16.msra.mxu3 %v1641_v40 }
 0x16f   :  { %v508_v0 = vpop.f32.mrf.mxu1 }
 0x170   :  { %v541_v2 = vadd.f32 %v508_v0, %v1700_v45 }
 0x172   :  { %v1291_v8 = vmul.f32 -1.442695, %v541_v2 }
 0x174   :  { %1354 = vpow2.f32 %v1291_v8 }
 0x175   :  { %v521_v10 = vpop.f32.mrf.mxu2 }
 0x176   :  { %v561_v12 = vadd.f32 %v521_v10, %v172_v1  ;;  %v534_v6 = vpop.f32.mrf.mxu3 }
 0x177   :  { %v510_v42 = vpop.f32.mrf.mxu1 }
 0x178   :  { %v1292_v19 = vmul.f32 -1.442695, %v561_v12 }
 0x17a   :  { %v1355_v20 = vpop.eup %1354  ;;  %1356 = vpow2.f32 %v1292_v19 }
 0x17b   :  { %v545_v21 = vadd.f32 1.0, %v1355_v20 }
 0x17d   :  { %1358 = vrcp.f32 %v545_v21  ;;  %v523_v24 = vpop.f32.mrf.mxu2  ;;  %v557_v2 = vand.u32 2147483648, %v545_v21  ;;  %v555_v8 = vand.u32 2147483647, %v545_v21  ;;  %vm551_vm10 = vweird.f32 %v545_v21 }
 0x17e   :  { %v536_v25 = vpop.f32.mrf.mxu3  ;;  %v581_v24 = vadd.f32 %v1720_v35, %v534_v6 }
 0x17f   :  { %v558_v12 = vor.u32 1.1754944e-38, %v557_v2  ;;  %vm556_vm12 = vcmp.eq.f32.partialorder %v555_v8, 8.507059e+37  ;;  %v201_v25 = vadd.f32 %v200_v37, %v1723_v51 }
 0x180   :  { %v1357_v15 = vpop.eup %1356 }
 0x181   :  { %v565_v32 = vadd.f32 1.0, %v1357_v15 }
 0x183   :  { %v1359_v61 = vpop.eup %1358  ;;  %1360 = vrcp.f32 %v565_v32  ;;  %v575_v60 = vand.u32 2147483647, %v565_v32  ;;  %vm571_vm14 = vweird.f32 %v565_v32 }
 0x184   :  { %v547_v45 = vmul.f32 %v1359_v61, %v545_v21  ;;  %vm552_vm9 = vweird.f32 %v1359_v61 }
 0x185   :  { %vm553_vm11 = vmor %vm551_vm10, %vm552_vm9  ;;  %vm576_vm0 = vcmp.eq.f32.partialorder %v575_v60, 8.507059e+37 }
 0x186   :  { %v548_v0 = vsub.f32 1.0, %v547_v45  ;;  %v577_v45 = vand.u32 2147483648, %v565_v32 }
 0x188   :  { %v549_v33 = vmul.f32 %v1359_v61, %v548_v0  ;;  %v578_v21 = vor.u32 1.1754944e-38, %v577_v45 }
 0x189   :  { %v1361_v1 = vpop.eup %1360 }
 0x18a   :  { %v567_v10 = vmul.f32 %v1361_v1, %v565_v32  ;;  %v550_v42 = vadd.f32 %v1359_v61, %v549_v33  ;;  %vm572_vm13 = vweird.f32 %v1361_v1 }
 0x18b   :  { %vm573_vm15 = vmor %vm571_vm14, %vm572_vm13 }
 0x18c   :  { %v568_v19 = vsub.f32 1.0, %v567_v10  ;;  %v554_v20 = vsel %vm553_vm11, %v1359_v61, %v550_v42 }
 0x18d   :  { %v559_v15 = vsel %vm556_vm12, %v558_v12, %v554_v20 }
 0x18e   :  { %v569_v13 = vmul.f32 %v1361_v1, %v568_v19  ;;  %v582_v0 = vmul.f32 %v581_v24, %v559_v15 }
 0x190   :  { %v583_v59 = vadd.f32 %v582_v0, %v201_v25  ;;  %v570_v4 = vadd.f32 %v1361_v1, %v569_v13 }
 0x192   :  { %1362 = vtanh.f32 %v583_v59  ;;  %v574_v2 = vsel %vm573_vm15, %v1361_v1, %v570_v4  ;;  %v175_v4 = vadd.f32 %v1754_v38, %v1712_v5 }
 0x193   :  { %v579_v61 = vsel %vm576_vm0, %v578_v21, %v574_v2 }
 0x194   :  { %v585_v33 = vsub.f32 1.0, %v579_v61  ;;  %v587_v37 = vmul.f32 %v579_v61, %v1726_v28 }
 0x198   :  { %v1363_v8 = vpop.eup %1362 }
 0x199   :  { %v586_v6 = vmul.f32 %v1363_v8, %v585_v33 }
 0x19b   :  { %v1783_v10 = vadd.f32 %v587_v37, %v586_v6 }
 0x19d   :  { %v589_v42 = vpack.c.bf16 %v1783_v10, %v1783_v10 }
 0x19f   :  { %598 = vmatmul.bf16.vlgmr.msra.gmra.mxu0 %v589_v42  ;;  %611 = vmatmul.bf16.vlgmr.msra.gmra.mxu1 %v589_v42 }
 0x1a0   :  { %624 = vmatmul.bf16.vlgmr.msra.gmra.mxu2 %v589_v42  ;;  %798 = vmatpush.bf16.msra.mxu0 %v1510_v17 }
 0x1a1   :  { %863 = vmatpush.bf16.msra.mxu1 %v1500_v7  ;;  %876 = vmatpush.bf16.msra.mxu2 %v1565_v55 }
 0x1a4   :  { %799 = vmatpush.bf16.msra.mxu0 %v1518_v23 }
 0x1a5   :  { %864 = vmatpush.bf16.msra.mxu1 %v1503_v11  ;;  %877 = vmatpush.bf16.msra.mxu2 %v1586_v3 }
 0x1a8   :  { %800 = vmatpush.bf16.msra.mxu0 %v1524_v29 }
 0x1a9   :  { %865 = vmatpush.bf16.msra.mxu1 %v1513_v18  ;;  %878 = vmatpush.bf16.msra.mxu2 %v1594_v14 }
 0x1ac   :  { %801 = vmatpush.bf16.msra.mxu0 %v1533_v36 }
 0x1ad   :  { %866 = vmatpush.bf16.msra.mxu1 %v1521_v26  ;;  %879 = vmatpush.bf16.msra.mxu2 %v1607_v22 }
 0x1b0   :  { %802 = vmatpush.bf16.msra.mxu0 %v1558_v53 }
 0x1b1   :  { %867 = vmatpush.bf16.msra.mxu1 %v1527_v30  ;;  %880 = vmatpush.bf16.msra.mxu2 %v1615_v27 }
 0x1b4   :  { %803 = vmatpush.bf16.msra.mxu0 %v1576_v63 }
 0x1b5   :  { %868 = vmatpush.bf16.msra.mxu1 %v1539_v39  ;;  %881 = vmatpush.bf16.msra.mxu2 %v1623_v31 }
 0x1b8   :  { %804 = vmatpush.bf16.msra.mxu0 %v1589_v9 }
 0x1b9   :  { %869 = vmatpush.bf16.msra.mxu1 %v1554_v46  ;;  %882 = vmatpush.bf16.msra.mxu2 %v1629_v34 }
 0x1bc   :  { %805 = vmatpush.bf16.msra.mxu0 %v1597_v16 }
 0x1bd   :  { %870 = vmatpush.bf16.msra.mxu1 %v1562_v54  ;;  %883 = vmatpush.bf16.msra.mxu2 %v1641_v40 }
 0x21c   :  { %v599_v13 = vpop.f32.mrf.mxu0  ;;  %v612_v28 = vpop.f32.mrf.mxu1 }
 0x21d   :  { %v632_v59 = vadd.f32 %v599_v13, %v1702_v48  ;;  %v652_v60 = vadd.f32 %v612_v28, %v175_v4 }
 0x21f   :  { %v1293_v32 = vmul.f32 -1.442695, %v632_v59  ;;  %v1294_v1 = vmul.f32 -1.442695, %v652_v60 }
 0x221   :  { %1364 = vpow2.f32 %v1293_v32 }
 0x222   :  { %1366 = vpow2.f32 %v1294_v1  ;;  %v204_v1 = vadd.f32 %v1756_v41, %v1723_v51 }
 0x223   :  { %v625_v12 = vpop.f32.mrf.mxu2 }
 0x224   :  { %v601_v19 = vpop.f32.mrf.mxu0  ;;  %v614_v20 = vpop.f32.mrf.mxu1  ;;  %v672_v59 = vadd.f32 %v1720_v35, %v625_v12 }
 0x227   :  { %v1365_v24 = vpop.eup %1364 }
 0x228   :  { %v1367_v25 = vpop.eup %1366  ;;  %v636_v15 = vadd.f32 1.0, %v1365_v24 }
 0x229   :  { %v656_v45 = vadd.f32 1.0, %v1367_v25 }
 0x22a   :  { %1368 = vrcp.f32 %v636_v15  ;;  %v648_v8 = vand.u32 2147483648, %v636_v15  ;;  %v646_v37 = vand.u32 2147483647, %v636_v15  ;;  %vm642_vm2 = vweird.f32 %v636_v15 }
 0x22b   :  { %1370 = vrcp.f32 %v656_v45  ;;  %v627_v0 = vpop.f32.mrf.mxu2  ;;  %v668_v19 = vand.u32 2147483648, %v656_v45  ;;  %vm662_vm6 = vweird.f32 %v656_v45  ;;  %v666_v24 = vand.u32 2147483647, %v656_v45 }
 0x22c   :  { %v649_v13 = vor.u32 1.1754944e-38, %v648_v8  ;;  %vm647_vm4 = vcmp.eq.f32.partialorder %v646_v37, 8.507059e+37 }
 0x22d   :  { %vm667_vm8 = vcmp.eq.f32.partialorder %v666_v24, 8.507059e+37 }
 0x230   :  { %v1369_v38 = vpop.eup %1368 }
 0x231   :  { %v1371_v21 = vpop.eup %1370  ;;  %v638_v2 = vmul.f32 %v1369_v38, %v636_v15  ;;  %vm643_vm1 = vweird.f32 %v1369_v38  ;;  %v669_v15 = vor.u32 1.1754944e-38, %v668_v19 }
 0x232   :  { %v658_v61 = vmul.f32 %v1371_v21, %v656_v45  ;;  %vm644_vm3 = vmor %vm642_vm2, %vm643_vm1  ;;  %vm663_vm5 = vweird.f32 %v1371_v21 }
 0x233   :  { %v639_v48 = vsub.f32 1.0, %v638_v2  ;;  %vm664_vm7 = vmor %vm662_vm6, %vm663_vm5 }
 0x234   :  { %v659_v33 = vsub.f32 1.0, %v658_v61 }
 0x235   :  { %v640_v6 = vmul.f32 %v1369_v38, %v639_v48 }
 0x236   :  { %v660_v42 = vmul.f32 %v1371_v21, %v659_v33 }
 0x237   :  { %v641_v4 = vadd.f32 %v1369_v38, %v640_v6 }
 0x238   :  { %v661_v32 = vadd.f32 %v1371_v21, %v660_v42 }
 0x239   :  { %v645_v28 = vsel %vm644_vm3, %v1369_v38, %v641_v4 }
 0x23a   :  { %v650_v60 = vsel %vm647_vm4, %v649_v13, %v645_v28  ;;  %v665_v0 = vsel %vm664_vm7, %v1371_v21, %v661_v32 }
 0x23b   :  { %v673_v20 = vmul.f32 %v672_v59, %v650_v60  ;;  %v670_v38 = vsel %vm667_vm8, %v669_v15, %v665_v0 }
 0x23c   :  { %v676_v2 = vsub.f32 1.0, %v670_v38  ;;  %v678_v48 = vmul.f32 %v670_v38, %v1783_v10  ;;  %v177_v10 = vadd.f32 %v1758_v43, %v1712_v5 }
 0x23d   :  { %v674_v25 = vadd.f32 %v673_v20, %v204_v1 }
 0x23f   :  { %1372 = vtanh.f32 %v674_v25 }
 0x245   :  { %v1373_v61 = vpop.eup %1372 }
 0x246   :  { %v677_v12 = vmul.f32 %v1373_v61, %v676_v2 }
 0x248   :  { %v1818_v33 = vadd.f32 %v678_v48, %v677_v12 }
 0x24a   :  { %v680_v41 = vpack.c.bf16 %v1818_v33, %v1818_v33 }
 0x24c   :  { %689 = vmatmul.bf16.vlgmr.msrb.gmra.mxu3 %v680_v41  ;;  %702 = vmatmul.bf16.vlgmr.msrb.gmra.mxu0 %v680_v41 }
 0x24d   :  { %715 = vmatmul.bf16.vlgmr.msrb.gmra.mxu1 %v680_v41  ;;  %889 = vmatpush.bf16.msrb.mxu3 %v1510_v17 }
 0x24e   :  { %954 = vmatpush.bf16.msrb.mxu0 %v1500_v7  ;;  %967 = vmatpush.bf16.msrb.mxu1 %v1565_v55 }
 0x251   :  { %890 = vmatpush.bf16.msrb.mxu3 %v1518_v23 }
 0x252   :  { %955 = vmatpush.bf16.msrb.mxu0 %v1503_v11  ;;  %968 = vmatpush.bf16.msrb.mxu1 %v1586_v3 }
 0x255   :  { %891 = vmatpush.bf16.msrb.mxu3 %v1524_v29 }
 0x256   :  { %956 = vmatpush.bf16.msrb.mxu0 %v1513_v18  ;;  %969 = vmatpush.bf16.msrb.mxu1 %v1594_v14 }
 0x259   :  { %892 = vmatpush.bf16.msrb.mxu3 %v1533_v36 }
 0x25a   :  { %957 = vmatpush.bf16.msrb.mxu0 %v1521_v26  ;;  %970 = vmatpush.bf16.msrb.mxu1 %v1607_v22 }
 0x25d   :  { %893 = vmatpush.bf16.msrb.mxu3 %v1558_v53 }
 0x25e   :  { %958 = vmatpush.bf16.msrb.mxu0 %v1527_v30  ;;  %971 = vmatpush.bf16.msrb.mxu1 %v1615_v27 }
 0x261   :  { %894 = vmatpush.bf16.msrb.mxu3 %v1576_v63 }
 0x262   :  { %959 = vmatpush.bf16.msrb.mxu0 %v1539_v39  ;;  %972 = vmatpush.bf16.msrb.mxu1 %v1623_v31 }
 0x265   :  { %895 = vmatpush.bf16.msrb.mxu3 %v1589_v9 }
 0x266   :  { %960 = vmatpush.bf16.msrb.mxu0 %v1554_v46  ;;  %973 = vmatpush.bf16.msrb.mxu1 %v1629_v34 }
 0x269   :  { %896 = vmatpush.bf16.msrb.mxu3 %v1597_v16 }
 0x26a   :  { %961 = vmatpush.bf16.msrb.mxu0 %v1562_v54  ;;  %974 = vmatpush.bf16.msrb.mxu1 %v1641_v40 }
 0x2c9   :  { %v703_v45 = vpop.f32.mrf.mxu0 }
 0x2ca   :  { %v743_v21 = vadd.f32 %v703_v45, %v177_v10  ;;  %v716_v8 = vpop.f32.mrf.mxu1 }
 0x2cb   :  { %v763_v41 = vadd.f32 %v1720_v35, %v716_v8 }
 0x2cc   :  { %v1296_v6 = vmul.f32 -1.442695, %v743_v21 }
 0x2ce   :  { %1374 = vpow2.f32 %v1296_v6  ;;  %v206_v6 = vadd.f32 %v1760_v44, %v1723_v51 }
 0x2cf   :  { %v690_v37 = vpop.f32.mrf.mxu3 }
 0x2d0   :  { %v723_v42 = vadd.f32 %v690_v37, %v1704_v50 }
 0x2d1   :  { %v705_v4 = vpop.f32.mrf.mxu0 }
 0x2d2   :  { %v1295_v13 = vmul.f32 -1.442695, %v723_v42  ;;  %v718_v28 = vpop.f32.mrf.mxu1 }
 0x2d4   :  { %v1375_v59 = vpop.eup %1374  ;;  %1376 = vpow2.f32 %v1295_v13 }
 0x2d5   :  { %v747_v60 = vadd.f32 1.0, %v1375_v59 }
 0x2d7   :  { %v692_v32 = vpop.f32.mrf.mxu3  ;;  %1378 = vrcp.f32 %v747_v60  ;;  %v759_v37 = vand.u32 2147483648, %v747_v60  ;;  %vm753_vm14 = vweird.f32 %v747_v60  ;;  %v757_v4 = vand.u32 2147483647, %v747_v60 }
 0x2d9   :  { %v760_v59 = vor.u32 1.1754944e-38, %v759_v37  ;;  %vm758_vm0 = vcmp.eq.f32.partialorder %v757_v4, 8.507059e+37 }
 0x2da   :  { %v1377_v1 = vpop.eup %1376 }
 0x2db   :  { %v727_v19 = vadd.f32 1.0, %v1377_v1 }
 0x2dd   :  { %1380 = vrcp.f32 %v727_v19  ;;  %v1379_v43 = vpop.eup %1378  ;;  %v739_v38 = vand.u32 2147483648, %v727_v19  ;;  %v737_v50 = vand.u32 2147483647, %v727_v19  ;;  %vm733_vm10 = vweird.f32 %v727_v19 }
 0x2de   :  { %v749_v20 = vmul.f32 %v1379_v43, %v747_v60  ;;  %vm754_vm13 = vweird.f32 %v1379_v43 }
 0x2df   :  { %v740_v48 = vor.u32 1.1754944e-38, %v739_v38  ;;  %vm738_vm12 = vcmp.eq.f32.partialorder %v737_v50, 8.507059e+37  ;;  %vm755_vm15 = vmor %vm753_vm14, %vm754_vm13 }
 0x2e0   :  { %v750_v0 = vsub.f32 1.0, %v749_v20 }
 0x2e2   :  { %v751_v61 = vmul.f32 %v1379_v43, %v750_v0 }
 0x2e3   :  { %v1381_v24 = vpop.eup %1380 }
 0x2e4   :  { %v729_v25 = vmul.f32 %v1381_v24, %v727_v19  ;;  %vm734_vm9 = vweird.f32 %v1381_v24  ;;  %v752_v21 = vadd.f32 %v1379_v43, %v751_v61 }
 0x2e5   :  { %vm735_vm11 = vmor %vm733_vm10, %vm734_vm9 }
 0x2e6   :  { %v730_v15 = vsub.f32 1.0, %v729_v25  ;;  %v756_v28 = vsel %vm755_vm15, %v1379_v43, %v752_v21 }
 0x2e7   :  { %v761_v32 = vsel %vm758_vm0, %v760_v59, %v756_v28 }
 0x2e8   :  { %v731_v2 = vmul.f32 %v1381_v24, %v730_v15  ;;  %v767_v8 = vsub.f32 1.0, %v761_v32  ;;  %v769_v20 = vmul.f32 %v761_v32, %v1818_v33 }
 0x2ea   :  { %v732_v12 = vadd.f32 %v1381_v24, %v731_v2 }
 0x2ec   :  { %v736_v10 = vsel %vm735_vm11, %v1381_v24, %v732_v12 }
 0x2ed   :  { %v741_v45 = vsel %vm738_vm12, %v740_v48, %v736_v10  ;;  %v209_v10 = vadd.f32 %v1764_v49, %v1723_v51 }
 0x2ee   :  { %v764_v42 = vmul.f32 %v763_v41, %v741_v45 }
 0x2f0   :  { %v765_v13 = vadd.f32 %v764_v42, %v206_v6 }
 0x2f2   :  { %1382 = vtanh.f32 %v765_v13 }
 0x2f8   :  { %v1383_v1 = vpop.eup %1382 }
 0x2f9   :  { %v768_v19 = vmul.f32 %v1383_v1, %v767_v8 }
 0x2fb   :  { %v1853_v24 = vadd.f32 %v769_v20, %v768_v19 }
 0x2fd   :  { %v771_v44 = vpack.c.bf16 %v1853_v24, %v1853_v24 }
 0x2ff   :  { %780 = vmatmul.bf16.vlgmr.msrb.gmra.mxu2 %v771_v44  ;;  %793 = vmatmul.bf16.vlgmr.msra.gmra.mxu3 %v771_v44 }
 0x300   :  { %806 = vmatmul.bf16.vlgmr.msra.gmra.mxu0 %v771_v44  ;;  %980 = vmatpush.bf16.msrb.mxu2 %v1510_v17 }
 0x301   :  { %1045 = vmatpush.bf16.msra.mxu3 %v1500_v7  ;;  %1058 = vmatpush.bf16.msra.mxu0 %v1565_v55 }
 0x304   :  { %981 = vmatpush.bf16.msrb.mxu2 %v1518_v23 }
 0x305   :  { %1046 = vmatpush.bf16.msra.mxu3 %v1503_v11  ;;  %1059 = vmatpush.bf16.msra.mxu0 %v1586_v3  ;;  %v180_v11 = vadd.f32 %v1762_v47, %v1712_v5 }
 0x308   :  { %982 = vmatpush.bf16.msrb.mxu2 %v1524_v29 }
 0x309   :  { %1047 = vmatpush.bf16.msra.mxu3 %v1513_v18  ;;  %1060 = vmatpush.bf16.msra.mxu0 %v1594_v14 }
 0x30c   :  { %983 = vmatpush.bf16.msrb.mxu2 %v1533_v36 }
 0x30d   :  { %1048 = vmatpush.bf16.msra.mxu3 %v1521_v26  ;;  %1061 = vmatpush.bf16.msra.mxu0 %v1607_v22 }
 0x310   :  { %984 = vmatpush.bf16.msrb.mxu2 %v1558_v53 }
 0x311   :  { %1049 = vmatpush.bf16.msra.mxu3 %v1527_v30  ;;  %1062 = vmatpush.bf16.msra.mxu0 %v1615_v27 }
 0x314   :  { %985 = vmatpush.bf16.msrb.mxu2 %v1576_v63 }
 0x315   :  { %1050 = vmatpush.bf16.msra.mxu3 %v1539_v39  ;;  %1063 = vmatpush.bf16.msra.mxu0 %v1623_v31 }
 0x318   :  { %986 = vmatpush.bf16.msrb.mxu2 %v1589_v9 }
 0x319   :  { %1051 = vmatpush.bf16.msra.mxu3 %v1554_v46  ;;  %1064 = vmatpush.bf16.msra.mxu0 %v1629_v34 }
 0x31c   :  { %987 = vmatpush.bf16.msrb.mxu2 %v1597_v16 }
 0x31d   :  { %1052 = vmatpush.bf16.msra.mxu3 %v1562_v54  ;;  %1065 = vmatpush.bf16.msra.mxu0 %v1641_v40 }
 0x37d   :  { %v807_v7 = vpop.f32.mrf.mxu0 }
 0x37e   :  { %v854_v61 = vadd.f32 %v1720_v35, %v807_v7 }
 0x382   :  { %v781_v18 = vpop.f32.mrf.mxu2  ;;  %v794_v26 = vpop.f32.mrf.mxu3 }
 0x383   :  { %v814_v30 = vadd.f32 %v781_v18, %v1706_v58  ;;  %v834_v39 = vadd.f32 %v794_v26, %v180_v11 }
 0x385   :  { %v1297_v55 = vmul.f32 -1.442695, %v814_v30  ;;  %v1298_v3 = vmul.f32 -1.442695, %v834_v39  ;;  %v809_v46 = vpop.f32.mrf.mxu0 }
 0x387   :  { %1384 = vpow2.f32 %v1297_v55 }
 0x388   :  { %1386 = vpow2.f32 %v1298_v3 }
 0x38a   :  { %v783_v14 = vpop.f32.mrf.mxu2  ;;  %v796_v22 = vpop.f32.mrf.mxu3 }
 0x38d   :  { %v1385_v27 = vpop.eup %1384 }
 0x38e   :  { %v1387_v54 = vpop.eup %1386  ;;  %v818_v31 = vadd.f32 1.0, %v1385_v27 }
 0x38f   :  { %v838_v34 = vadd.f32 1.0, %v1387_v54 }
 0x390   :  { %1388 = vrcp.f32 %v818_v31  ;;  %v830_v58 = vand.u32 2147483648, %v818_v31  ;;  %v828_v15 = vand.u32 2147483647, %v818_v31  ;;  %vm824_vm2 = vweird.f32 %v818_v31 }
 0x391   :  { %1390 = vrcp.f32 %v838_v34  ;;  %v850_v21 = vand.u32 2147483648, %v838_v34  ;;  %vm844_vm6 = vweird.f32 %v838_v34  ;;  %v848_v6 = vand.u32 2147483647, %v838_v34 }
 0x392   :  { %v831_v50 = vor.u32 1.1754944e-38, %v830_v58  ;;  %vm829_vm4 = vcmp.eq.f32.partialorder %v828_v15, 8.507059e+37 }
 0x393   :  { %v851_v4 = vor.u32 1.1754944e-38, %v850_v21  ;;  %vm849_vm8 = vcmp.eq.f32.partialorder %v848_v6, 8.507059e+37  ;;  %v1935_v21 = vld [vmem:[#allocation6_spill] sm:$0xff] }
 0x396   :  { %v1389_v40 = vpop.eup %1388 }
 0x397   :  { %v1391_v47 = vpop.eup %1390  ;;  %v820_v33 = vmul.f32 %v1389_v40, %v818_v31  ;;  %vm825_vm1 = vweird.f32 %v1389_v40 }
 0x398   :  { %v840_v60 = vmul.f32 %v1391_v47, %v838_v34  ;;  %vm826_vm3 = vmor %vm824_vm2, %vm825_vm1  ;;  %vm845_vm5 = vweird.f32 %v1391_v47  ;;  %v211_v34 = vadd.f32 %v1768_v56, %v1723_v51 }
 0x399   :  { %v821_v43 = vsub.f32 1.0, %v820_v33  ;;  %vm846_vm7 = vmor %vm844_vm6, %vm845_vm5 }
 0x39a   :  { %v841_v25 = vsub.f32 1.0, %v840_v60 }
 0x39b   :  { %v822_v0 = vmul.f32 %v1389_v40, %v821_v43 }
 0x39c   :  { %v842_v38 = vmul.f32 %v1391_v47, %v841_v25 }
 0x39d   :  { %v823_v2 = vadd.f32 %v1389_v40, %v822_v0 }
 0x39e   :  { %v843_v41 = vadd.f32 %v1391_v47, %v842_v38 }
 0x39f   :  { %v827_v12 = vsel %vm826_vm3, %v1389_v40, %v823_v2 }
 0x3a0   :  { %v832_v48 = vsel %vm829_vm4, %v831_v50, %v827_v12  ;;  %v847_v42 = vsel %vm846_vm7, %v1391_v47, %v843_v41  ;;  %v185_v41 = vadd.f32 %v1770_v57, %v1712_v5 }
 0x3a1   :  { %v855_v45 = vmul.f32 %v854_v61, %v832_v48  ;;  %v852_v13 = vsel %vm849_vm8, %v851_v4, %v847_v42 }
 0x3a2   :  { %v858_v28 = vsub.f32 1.0, %v852_v13  ;;  %v860_v8 = vmul.f32 %v852_v13, %v1853_v24 }
 0x3a3   :  { %v856_v37 = vadd.f32 %v855_v45, %v209_v10 }
 0x3a5   :  { %1392 = vtanh.f32 %v856_v37 }
 0x3ab   :  { %v1393_v59 = vpop.eup %1392 }
 0x3ac   :  { %v859_v32 = vmul.f32 %v1393_v59, %v858_v28 }
 0x3ae   :  { %v1888_v1 = vadd.f32 %v860_v8, %v859_v32 }
 0x3b0   :  { %v862_v49 = vpack.c.bf16 %v1888_v1, %v1888_v1 }
 0x3b2   :  { %871 = vmatmul.bf16.vlgmr.msra.gmra.mxu1 %v862_v49  ;;  %884 = vmatmul.bf16.vlgmr.msra.gmra.mxu2 %v862_v49 }
 0x3b3   :  { %897 = vmatmul.bf16.vlgmr.msrb.gmra.mxu3 %v862_v49  ;;  %1071 = vmatpush.bf16.msra.mxu1 %v1510_v17  ;;  %v182_v17 = vadd.f32 %v1766_v52, %v1712_v5 }
 0x3b7   :  { %1072 = vmatpush.bf16.msra.mxu1 %v1518_v23 }
 0x3bb   :  { %1073 = vmatpush.bf16.msra.mxu1 %v1524_v29 }
 0x3bf   :  { %1074 = vmatpush.bf16.msra.mxu1 %v1533_v36 }
 0x3c3   :  { %1075 = vmatpush.bf16.msra.mxu1 %v1558_v53 }
 0x3c7   :  { %1076 = vmatpush.bf16.msra.mxu1 %v1576_v63 }
 0x3cb   :  { %1077 = vmatpush.bf16.msra.mxu1 %v1589_v9 }
 0x3cf   :  { %1078 = vmatpush.bf16.msra.mxu1 %v1597_v16 }
 0x42f   :  { %v872_v19 = vpop.f32.mrf.mxu1 }
 0x430   :  { %v905_v20 = vadd.f32 %v872_v19, %v1708_v62 }
 0x432   :  { %v1299_v24 = vmul.f32 -1.442695, %v905_v20 }
 0x434   :  { %1394 = vpow2.f32 %v1299_v24 }
 0x435   :  { %v885_v23 = vpop.f32.mrf.mxu2 }
 0x436   :  { %v925_v29 = vadd.f32 %v885_v23, %v182_v17  ;;  %v898_v44 = vpop.f32.mrf.mxu3 }
 0x437   :  { %v874_v36 = vpop.f32.mrf.mxu1  ;;  %v945_v31 = vadd.f32 %v1720_v35, %v898_v44 }
 0x438   :  { %v1300_v7 = vmul.f32 -1.442695, %v925_v29 }
 0x43a   :  { %v1395_v53 = vpop.eup %1394  ;;  %1396 = vpow2.f32 %v1300_v7 }
 0x43b   :  { %v909_v63 = vadd.f32 1.0, %v1395_v53 }
 0x43d   :  { %1398 = vrcp.f32 %v909_v63  ;;  %v887_v9 = vpop.f32.mrf.mxu2  ;;  %v921_v39 = vand.u32 2147483648, %v909_v63  ;;  %v919_v55 = vand.u32 2147483647, %v909_v63  ;;  %vm915_vm10 = vweird.f32 %v909_v63 }
 0x43e   :  { %v900_v11 = vpop.f32.mrf.mxu3 }
 0x43f   :  { %v922_v22 = vor.u32 1.1754944e-38, %v921_v39  ;;  %vm920_vm12 = vcmp.eq.f32.partialorder %v919_v55, 8.507059e+37 }
 0x440   :  { %v1397_v16 = vpop.eup %1396 }
 0x441   :  { %v929_v18 = vadd.f32 1.0, %v1397_v16 }
 0x443   :  { %v1399_v26 = vpop.eup %1398  ;;  %1400 = vrcp.f32 %v929_v18  ;;  %v941_v33 = vand.u32 2147483648, %v929_v18  ;;  %v939_v43 = vand.u32 2147483647, %v929_v18  ;;  %vm935_vm14 = vweird.f32 %v929_v18 }
 0x444   :  { %v911_v62 = vmul.f32 %v1399_v26, %v909_v63  ;;  %vm916_vm9 = vweird.f32 %v1399_v26 }
 0x445   :  { %vm917_vm11 = vmor %vm915_vm10, %vm916_vm9  ;;  %v942_v0 = vor.u32 1.1754944e-38, %v941_v33  ;;  %vm940_vm0 = vcmp.eq.f32.partialorder %v939_v43, 8.507059e+37 }
 0x446   :  { %v912_v30 = vsub.f32 1.0, %v911_v62  ;;  %v1936_v62 = vld [vmem:[#allocation8_spill] sm:$0xff] }
 0x448   :  { %v913_v52 = vmul.f32 %v1399_v26, %v912_v30  ;;  %v214_v30 = vadd.f32 %v1936_v62, %v1723_v51 }
 0x449   :  { %v1401_v3 = vpop.eup %1400 }
 0x44a   :  { %v931_v46 = vmul.f32 %v1401_v3, %v929_v18  ;;  %v914_v14 = vadd.f32 %v1399_v26, %v913_v52  ;;  %vm936_vm13 = vweird.f32 %v1401_v3 }
 0x44b   :  { %vm937_vm15 = vmor %vm935_vm14, %vm936_vm13 }
 0x44c   :  { %v932_v27 = vsub.f32 1.0, %v931_v46  ;;  %v918_v54 = vsel %vm917_vm11, %v1399_v26, %v914_v14 }
 0x44d   :  { %v923_v40 = vsel %vm920_vm12, %v922_v22, %v918_v54 }
 0x44e   :  { %v933_v47 = vmul.f32 %v1401_v3, %v932_v27  ;;  %v946_v60 = vmul.f32 %v945_v31, %v923_v40 }
 0x450   :  { %v947_v58 = vadd.f32 %v946_v60, %v211_v34  ;;  %v934_v25 = vadd.f32 %v1401_v3, %v933_v47  ;;  %v1937_v47 = vld [vmem:[#allocation9_spill] sm:$0xff] }
 0x451   :  { %v187_v33 = vadd.f32 %v1937_v47, %v1712_v5 }
 0x452   :  { %1402 = vtanh.f32 %v947_v58  ;;  %v938_v15 = vsel %vm937_vm15, %v1401_v3, %v934_v25 }
 0x453   :  { %v943_v38 = vsel %vm940_vm0, %v942_v0, %v938_v15  ;;  %v1938_v15 = vld [vmem:[#allocation7_spill] sm:$0xff] }
 0x454   :  { %v949_v2 = vsub.f32 1.0, %v943_v38  ;;  %v951_v56 = vmul.f32 %v943_v38, %v1888_v1 }
 0x458   :  { %v1403_v50 = vpop.eup %1402 }
 0x459   :  { %v950_v61 = vmul.f32 %v1403_v50, %v949_v2 }
 0x45b   :  { %v952_v12 = vadd.f32 %v951_v56, %v950_v61 }
 0x45d   :  { %v953_v48 = vpack.c.bf16 %v952_v12, %v952_v12 }
 0x45f   :  { %962 = vmatmul.bf16.vlgmr.msrb.gmra.mxu0 %v953_v48  ;;  %975 = vmatmul.bf16.vlgmr.msrb.gmra.mxu1 %v953_v48 }
 0x460   :  { %988 = vmatmul.bf16.vlgmr.msrb.gmra.mxu2 %v953_v48 }
 0x4dc   :  { %v963_v10 = vpop.f32.mrf.mxu0  ;;  %v976_v45 = vpop.f32.mrf.mxu1 }
 0x4dd   :  { %v996_v6 = vadd.f32 %v963_v10, %v1935_v21  ;;  %v1016_v37 = vadd.f32 %v976_v45, %v185_v41 }
 0x4df   :  { %v1301_v42 = vmul.f32 -1.442695, %v996_v6  ;;  %v1302_v4 = vmul.f32 -1.442695, %v1016_v37 }
 0x4e1   :  { %1404 = vpow2.f32 %v1301_v42 }
 0x4e2   :  { %1406 = vpow2.f32 %v1302_v4 }
 0x4e3   :  { %v989_v13 = vpop.f32.mrf.mxu2 }
 0x4e4   :  { %v965_v28 = vpop.f32.mrf.mxu0  ;;  %v978_v59 = vpop.f32.mrf.mxu1  ;;  %v1036_v16 = vadd.f32 %v1720_v35, %v989_v13 }
 0x4e7   :  { %v1405_v32 = vpop.eup %1404 }
 0x4e8   :  { %v1407_v8 = vpop.eup %1406  ;;  %v1000_v1 = vadd.f32 1.0, %v1405_v32 }
 0x4e9   :  { %v1020_v49 = vadd.f32 1.0, %v1407_v8 }
 0x4ea   :  { %1408 = vrcp.f32 %v1000_v1  ;;  %v1012_v44 = vand.u32 2147483648, %v1000_v1  ;;  %v1010_v7 = vand.u32 2147483647, %v1000_v1  ;;  %vm1006_vm2 = vweird.f32 %v1000_v1 }
 0x4eb   :  { %1410 = vrcp.f32 %v1020_v49  ;;  %v991_v19 = vpop.f32.mrf.mxu2  ;;  %v1032_v39 = vand.u32 2147483648, %v1020_v49  ;;  %vm1026_vm6 = vweird.f32 %v1020_v49  ;;  %v1030_v55 = vand.u32 2147483647, %v1020_v49 }
 0x4ec   :  { %v1013_v9 = vor.u32 1.1754944e-38, %v1012_v44  ;;  %vm1011_vm4 = vcmp.eq.f32.partialorder %v1010_v7, 8.507059e+37 }
 0x4ed   :  { %v1033_v14 = vor.u32 1.1754944e-38, %v1032_v39  ;;  %vm1031_vm8 = vcmp.eq.f32.partialorder %v1030_v55, 8.507059e+37 }
 0x4f0   :  { %v1409_v57 = vpop.eup %1408 }
 0x4f1   :  { %v1411_v20 = vpop.eup %1410  ;;  %v1002_v24 = vmul.f32 %v1409_v57, %v1000_v1  ;;  %vm1007_vm1 = vweird.f32 %v1409_v57  ;;  %v1424_v1 = vld [vmem:[%s1928_s4] ss:$0 sm:$0xff] }
 0x4f2   :  { %v1022_v17 = vmul.f32 %v1411_v20, %v1020_v49  ;;  %vm1008_vm3 = vmor %vm1006_vm2, %vm1007_vm1  ;;  %vm1027_vm5 = vweird.f32 %v1411_v20 }
 0x4f3   :  { %v1003_v23 = vsub.f32 1.0, %v1002_v24  ;;  %vm1028_vm7 = vmor %vm1026_vm6, %vm1027_vm5  ;;  %v1939_v24 = vld [vmem:[#allocation10_spill] sm:$0xff] }
 0x4f4   :  { %v1023_v29 = vsub.f32 1.0, %v1022_v17  ;;  %v216_v17 = vadd.f32 %v1939_v24, %v1723_v51 }
 0x4f5   :  { %v1004_v36 = vmul.f32 %v1409_v57, %v1003_v23 }
 0x4f6   :  { %v1024_v53 = vmul.f32 %v1411_v20, %v1023_v29 }
 0x4f7   :  { %v1005_v63 = vadd.f32 %v1409_v57, %v1004_v36 }
 0x4f8   :  { %v1025_v26 = vadd.f32 %v1411_v20, %v1024_v53 }
 0x4f9   :  { %v1009_v11 = vsel %vm1008_vm3, %v1409_v57, %v1005_v63 }
 0x4fa   :  { %v1014_v18 = vsel %vm1011_vm4, %v1013_v9, %v1009_v11  ;;  %v1029_v46 = vsel %vm1028_vm7, %v1411_v20, %v1025_v26 }
 0x4fb   :  { %v1037_v52 = vmul.f32 %v1036_v16, %v1014_v18  ;;  %v1034_v22 = vsel %vm1031_vm8, %v1033_v14, %v1029_v46 }
 0x4fc   :  { %v1040_v27 = vsub.f32 1.0, %v1034_v22  ;;  %v1042_v31 = vmul.f32 %v1034_v22, %v952_v12 }
 0x4fd   :  { %v1038_v3 = vadd.f32 %v1037_v52, %v214_v30 }
 0x4ff   :  { %1412 = vtanh.f32 %v1038_v3 }
 0x505   :  { %v1413_v54 = vpop.eup %1412 }
 0x506   :  { %v1041_v35 = vmul.f32 %v1413_v54, %v1040_v27 }
 0x508   :  { %v1043_v34 = vadd.f32 %v1042_v31, %v1041_v35 }
 0x50a   :  { %v1044_v40 = vpack.c.bf16 %v1043_v34, %v1043_v34 }
 0x50c   :  { %1053 = vmatmul.bf16.vlgmr.msra.gmra.mxu3 %v1044_v40  ;;  %1066 = vmatmul.bf16.vlgmr.msra.gmra.mxu0 %v1044_v40 }
 0x50d   :  { %1079 = vmatmul.bf16.vlgmr.msra.gmra.mxu1 %v1044_v40 }
 0x589   :  { %v1067_v60 = vpop.f32.mrf.mxu0 }
 0x58a   :  { %v1107_v43 = vadd.f32 %v1067_v60, %v187_v33  ;;  %v1080_v58 = vpop.f32.mrf.mxu1 }
 0x58b   :  { %v1127_v49 = vadd.f32 %v1424_v1, %v1080_v58 }
 0x58c   :  { %v1304_v25 = vmul.f32 -1.442695, %v1107_v43 }
 0x58e   :  { %1414 = vpow2.f32 %v1304_v25 }
 0x58f   :  { %v1054_v0 = vpop.f32.mrf.mxu3 }
 0x590   :  { %v1087_v38 = vadd.f32 %v1054_v0, %v1938_v15 }
 0x591   :  { %v1069_v2 = vpop.f32.mrf.mxu0 }
 0x592   :  { %v1303_v50 = vmul.f32 -1.442695, %v1087_v38  ;;  %v1082_v61 = vpop.f32.mrf.mxu1 }
 0x594   :  { %v1415_v56 = vpop.eup %1414  ;;  %1416 = vpow2.f32 %v1303_v50 }
 0x595   :  { %v1111_v12 = vadd.f32 1.0, %v1415_v56 }
 0x597   :  { %v1056_v48 = vpop.f32.mrf.mxu3  ;;  %1418 = vrcp.f32 %v1111_v12  ;;  %v1123_v23 = vand.u32 2147483648, %v1111_v12  ;;  %vm1117_vm14 = vweird.f32 %v1111_v12  ;;  %v1121_v44 = vand.u32 2147483647, %v1111_v12 }
 0x599   :  { %v1124_v53 = vor.u32 1.1754944e-38, %v1123_v23  ;;  %vm1122_vm0 = vcmp.eq.f32.partialorder %v1121_v44, 8.507059e+37 }
 0x59a   :  { %v1417_v41 = vpop.eup %1416 }
 0x59b   :  { %v1091_v10 = vadd.f32 1.0, %v1417_v41 }
 0x59d   :  { %1420 = vrcp.f32 %v1091_v10  ;;  %v1419_v5 = vpop.eup %1418  ;;  %v1103_v4 = vand.u32 2147483648, %v1091_v10  ;;  %v1101_v28 = vand.u32 2147483647, %v1091_v10  ;;  %vm1097_vm10 = vweird.f32 %v1091_v10 }
 0x59e   :  { %v1113_v45 = vmul.f32 %v1419_v5, %v1111_v12  ;;  %vm1118_vm13 = vweird.f32 %v1419_v5 }
 0x59f   :  { %v1104_v8 = vor.u32 1.1754944e-38, %v1103_v4  ;;  %vm1102_vm12 = vcmp.eq.f32.partialorder %v1101_v28, 8.507059e+37  ;;  %vm1119_vm15 = vmor %vm1117_vm14, %vm1118_vm13 }
 0x5a0   :  { %v1114_v37 = vsub.f32 1.0, %v1113_v45 }
 0x5a2   :  { %v1115_v59 = vmul.f32 %v1419_v5, %v1114_v37 }
 0x5a3   :  { %v1421_v21 = vpop.eup %1420 }
 0x5a4   :  { %v1093_v6 = vmul.f32 %v1421_v21, %v1091_v10  ;;  %vm1098_vm9 = vweird.f32 %v1421_v21  ;;  %v1116_v57 = vadd.f32 %v1419_v5, %v1115_v59 }
 0x5a5   :  { %vm1099_vm11 = vmor %vm1097_vm10, %vm1098_vm9 }
 0x5a6   :  { %v1094_v42 = vsub.f32 1.0, %v1093_v6  ;;  %v1120_v7 = vsel %vm1119_vm15, %v1419_v5, %v1116_v57 }
 0x5a7   :  { %v1125_v63 = vsel %vm1122_vm0, %v1124_v53, %v1120_v7 }
 0x5a8   :  { %v1095_v13 = vmul.f32 %v1421_v21, %v1094_v42  ;;  %v1131_v9 = vsub.f32 1.0, %v1125_v63  ;;  %v1133_v16 = vmul.f32 %v1125_v63, %v1043_v34 }
 0x5aa   :  { %v1096_v32 = vadd.f32 %v1421_v21, %v1095_v13 }
 0x5ac   :  { %v1100_v19 = vsel %vm1099_vm11, %v1421_v21, %v1096_v32 }
 0x5ad   :  { %v1105_v20 = vsel %vm1102_vm12, %v1104_v8, %v1100_v19 }
 0x5ae   :  { %v1128_v29 = vmul.f32 %v1127_v49, %v1105_v20 }
 0x5b0   :  { %v1129_v36 = vadd.f32 %v1128_v29, %v216_v17 }
 0x5b2   :  { %1422 = vtanh.f32 %v1129_v36 }
 0x5b8   :  { %v1423_v11 = vpop.eup %1422 }
 0x5b9   :  { %v1132_v18 = vmul.f32 %v1423_v11, %v1131_v9 }
 0x5bb   :  { %v1134_v26 = vadd.f32 %v1133_v16, %v1132_v18 }
 0x5bd   :  { %1135 = vst [vmem:[%s1929_s5] sm:$0xff] %v1134_v26 }
 0x5be   :  { %1140 = vsyncpa [#allocation4], 1 }

</bundles_post_ra>
